<compile_context>
chip_gen: v5e
topology: v5e:2x2
jax: 0.10.0
libtpu: 0.0.40
codegen_flags: <defaults>
</compile_context>

<pallas_src>
import jax
import jax.numpy as jnp
from jax.experimental import pallas as pl
from jax.experimental.pallas import tpu as pltpu

IN_DIM = 1      # config.inputSize = 1
HIDDEN = 10
OUT_DIM = 1
NPARAMS = 3 * HIDDEN + OUT_DIM      # 31 folded scalars
NPARAMS_PAD = 32                    # pad the SMEM param vector to 32 words


def _round_up(a, b):
    return -(-a // b) * b


def odenet_kernel(params_ref, x_ref, o_ref):
    """params_ref: SMEM f32[32] = [A(10), B(10), C(10), D, pad].

    A_j = 0.5*w1_j, B_j = 0.5*b1_j, C_j = 0.25*w2_j, D = 0.25*sum(w2) + 0.5*b2.
    x_ref / o_ref: (tile_rows, lanes) lane-dense batch slab in VMEM.
    Pure per-lane VPU/EUP work; the degenerate (K=1 / N=1) matmuls are a static
    10-way unroll over hidden units.
    """
    x = x_ref[...]
    # j = 0 initializes the accumulator (no zeros splat) and carries the folded
    # constant D as the scalar addend.
    t = jnp.tanh(x * params_ref[0] + params_ref[HIDDEN])
    acc = t * params_ref[2 * HIDDEN] + params_ref[3 * HIDDEN]
    for j in range(1, HIDDEN):                    # static 9-way remainder unroll
        t = jnp.tanh(x * params_ref[j] + params_ref[HIDDEN + j])
        acc = acc + t * params_ref[2 * HIDDEN + j]
    o_ref[...] = 0.5 * jnp.tanh(acc) + 0.5        # outer sigmoid, one EUP tanh


def odenet_forward(x, w1, b1, w2, b2, *, lanes=1024, max_tile_rows=512):
    """x: (N, 1) float32 -> (N, 1) float32 = sigmoid(sigmoid(x@W1+b1)@W2+b2)."""
    N = x.shape[0]
    assert x.shape == (N, IN_DIM)
    assert lanes % 128 == 0 and max_tile_rows % 8 == 0

    # --- fold sigmoid constants and layer-2 weights into the prefetched params ---
    w1f = w1.reshape(-1).astype(jnp.float32)
    b1f = b1.reshape(-1).astype(jnp.float32)
    w2f = w2.reshape(-1).astype(jnp.float32)
    b2f = b2.reshape(-1).astype(jnp.float32)
    A = 0.5 * w1f
    B = 0.5 * b1f
    C = 0.25 * w2f
    D = 0.25 * jnp.sum(w2f, keepdims=True) + 0.5 * b2f
    params = jnp.concatenate(
        [A, B, C, D, jnp.zeros((NPARAMS_PAD - NPARAMS,), jnp.float32)])

    # --- lane-dense slab geometry ---
    rows = _round_up(-(-N // lanes), 8)
    tile_rows = min(max_tile_rows, rows)
    rows = _round_up(rows, tile_rows)
    if rows > tile_rows:
        # Even number of grid steps so the "parallel" axis splits 50/50 across
        # v7x's two TensorCores (no-op cost on single-TC v5e/v6e).
        rows = _round_up(rows, 2 * tile_rows)
    n_pad = rows * lanes

    xf = x.reshape(N)
    if n_pad != N:
        # TODO(synk): for ragged N, mask only the final tile in-kernel (scalar-
        # prefetched valid-count) instead of padding/slicing the whole array.
        xf = jnp.pad(xf, (0, n_pad - N))
    slab = xf.reshape(rows, lanes)

    out_slab = pl.pallas_call(
        odenet_kernel,
        out_shape=jax.ShapeDtypeStruct((rows, lanes), jnp.float32),
        grid=(rows // tile_rows,),
        in_specs=[
            pl.BlockSpec(memory_space=pltpu.MemorySpace.SMEM),   # folded params
            pl.BlockSpec((tile_rows, lanes), lambda i: (i, 0)),  # x slab tile
        ],
        out_specs=pl.BlockSpec((tile_rows, lanes), lambda i: (i, 0)),
        compiler_params=pltpu.CompilerParams(
            dimension_semantics=("parallel",),     # shards grid across TCs (v7x)
            vmem_limit_bytes=32 * 1024 * 1024,     # headroom for 2 MiB tiles + scratch
        ),
    )(params, slab)

    if n_pad == N:
        return out_slab.reshape(N, OUT_DIM)
    return out_slab.reshape(n_pad)[:N].reshape(N, OUT_DIM)


def init_params(key):
    """Deterministic init mimicking nn.Linear's U(-1/sqrt(fan_in), 1/sqrt(fan_in))."""
    k1, k2, k3, k4 = jax.random.split(key, 4)
    bound1 = 1.0 / jnp.sqrt(jnp.float32(IN_DIM))
    bound2 = 1.0 / jnp.sqrt(jnp.float32(HIDDEN))
    # Stored as (in, out) so y = x @ W (PyTorch stores (out, in)).
    w1 = jax.random.uniform(k1, (IN_DIM, HIDDEN), jnp.float32, -bound1, bound1)
    b1 = jax.random.uniform(k2, (1, HIDDEN), jnp.float32, -bound1, bound1)
    w2 = jax.random.uniform(k3, (HIDDEN, OUT_DIM), jnp.float32, -bound2, bound2)
    b2 = jax.random.uniform(k4, (1, OUT_DIM), jnp.float32, -bound2, bound2)
    return w1, b1, w2, b2


def odenet_reference(x, w1, b1, w2, b2):
    h = jax.nn.sigmoid(x @ w1 + b1)
    return jax.nn.sigmoid(h @ w2 + b2)


if __name__ == "__main__":
    key = jax.random.PRNGKey(0)
    pkey, _ = jax.random.split(key)
    w1, b1, w2, b2 = init_params(pkey)

    # Input consistent with the module's forward: values in [0, 2), shape (N, 1).
    N = 100000
    x = jnp.linspace(0.0, 2.0, N, endpoint=False,
                     dtype=jnp.float32).reshape(N, 1)

    # Small-tile override here only to exercise a multi-step (even-length) grid
    # and the ragged-N padding path; production callers should keep the ~2 MiB
    # defaults (lanes=1024, max_tile_rows=512).
    out = odenet_forward(x, w1, b1, w2, b2, lanes=512, max_tile_rows=32)
    out = jax.block_until_ready(out)

    ref = odenet_reference(x, w1, b1, w2, b2)
    assert out.shape == (N, 1)
    assert jnp.allclose(out, ref, atol=1e-5, rtol=1e-5)

    # Also check the default (large-tile, single-step) configuration once.
    out2 = jax.block_until_ready(odenet_forward(x, w1, b1, w2, b2))
    assert jnp.allclose(out2, ref, atol=1e-5, rtol=1e-5)

    print("KERNEL_OK")
</pallas_src>

<mosaic_0001>
module attributes {stable_mosaic.version = 11 : i64} {
  func.func @odenet_kernel(%arg0: i32, %arg1: memref<32xf32, #tpu.memory_space<smem>>, %arg2: memref<32x512xf32, #tpu.memory_space<vmem>>, %arg3: memref<32x512xf32, #tpu.memory_space<vmem>>) attributes {dimension_semantics = [#tpu.dimension_semantics<parallel>], iteration_bounds = array<i64: 8>, scalar_prefetch = 0 : i64, scratch_operands = 0 : i64, tpu.core_type = #tpu.core_type<tc>, window_params = [{transform_indices = @transform_0, window_bounds = array<i64: 32>}, {transform_indices = @transform_1, window_bounds = array<i64: 32, 512>}, {transform_indices = @transform_2, window_bounds = array<i64: 32, 512>}]} {
    %c0 = arith.constant 0 : index
    %c0_0 = arith.constant 0 : index
    %0 = vector.load %arg2[%c0, %c0_0] : memref<32x512xf32, #tpu.memory_space<vmem>>, vector<32x512xf32>
    %c0_1 = arith.constant 0 : index
    %1 = memref.load %arg1[%c0_1] : memref<32xf32, #tpu.memory_space<smem>>
    %2 = vector.broadcast %1 : f32 to vector<32x512xf32>
    %3 = arith.mulf %0, %2 : vector<32x512xf32>
    %c10 = arith.constant 10 : index
    %4 = memref.load %arg1[%c10] : memref<32xf32, #tpu.memory_space<smem>>
    %5 = vector.broadcast %4 : f32 to vector<32x512xf32>
    %6 = arith.addf %3, %5 : vector<32x512xf32>
    %7 = math.tanh %6 : vector<32x512xf32>
    %c20 = arith.constant 20 : index
    %8 = memref.load %arg1[%c20] : memref<32xf32, #tpu.memory_space<smem>>
    %9 = vector.broadcast %8 : f32 to vector<32x512xf32>
    %10 = arith.mulf %7, %9 : vector<32x512xf32>
    %c30 = arith.constant 30 : index
    %11 = memref.load %arg1[%c30] : memref<32xf32, #tpu.memory_space<smem>>
    %12 = vector.broadcast %11 : f32 to vector<32x512xf32>
    %13 = arith.addf %10, %12 : vector<32x512xf32>
    %c1 = arith.constant 1 : index
    %14 = memref.load %arg1[%c1] : memref<32xf32, #tpu.memory_space<smem>>
    %15 = vector.broadcast %14 : f32 to vector<32x512xf32>
    %16 = arith.mulf %0, %15 : vector<32x512xf32>
    %c11 = arith.constant 11 : index
    %17 = memref.load %arg1[%c11] : memref<32xf32, #tpu.memory_space<smem>>
    %18 = vector.broadcast %17 : f32 to vector<32x512xf32>
    %19 = arith.addf %16, %18 : vector<32x512xf32>
    %20 = math.tanh %19 : vector<32x512xf32>
    %c21 = arith.constant 21 : index
    %21 = memref.load %arg1[%c21] : memref<32xf32, #tpu.memory_space<smem>>
    %22 = vector.broadcast %21 : f32 to vector<32x512xf32>
    %23 = arith.mulf %20, %22 : vector<32x512xf32>
    %24 = arith.addf %13, %23 : vector<32x512xf32>
    %c2 = arith.constant 2 : index
    %25 = memref.load %arg1[%c2] : memref<32xf32, #tpu.memory_space<smem>>
    %26 = vector.broadcast %25 : f32 to vector<32x512xf32>
    %27 = arith.mulf %0, %26 : vector<32x512xf32>
    %c12 = arith.constant 12 : index
    %28 = memref.load %arg1[%c12] : memref<32xf32, #tpu.memory_space<smem>>
    %29 = vector.broadcast %28 : f32 to vector<32x512xf32>
    %30 = arith.addf %27, %29 : vector<32x512xf32>
    %31 = math.tanh %30 : vector<32x512xf32>
    %c22 = arith.constant 22 : index
    %32 = memref.load %arg1[%c22] : memref<32xf32, #tpu.memory_space<smem>>
    %33 = vector.broadcast %32 : f32 to vector<32x512xf32>
    %34 = arith.mulf %31, %33 : vector<32x512xf32>
    %35 = arith.addf %24, %34 : vector<32x512xf32>
    %c3 = arith.constant 3 : index
    %36 = memref.load %arg1[%c3] : memref<32xf32, #tpu.memory_space<smem>>
    %37 = vector.broadcast %36 : f32 to vector<32x512xf32>
    %38 = arith.mulf %0, %37 : vector<32x512xf32>
    %c13 = arith.constant 13 : index
    %39 = memref.load %arg1[%c13] : memref<32xf32, #tpu.memory_space<smem>>
    %40 = vector.broadcast %39 : f32 to vector<32x512xf32>
    %41 = arith.addf %38, %40 : vector<32x512xf32>
    %42 = math.tanh %41 : vector<32x512xf32>
    %c23 = arith.constant 23 : index
    %43 = memref.load %arg1[%c23] : memref<32xf32, #tpu.memory_space<smem>>
    %44 = vector.broadcast %43 : f32 to vector<32x512xf32>
    %45 = arith.mulf %42, %44 : vector<32x512xf32>
    %46 = arith.addf %35, %45 : vector<32x512xf32>
    %c4 = arith.constant 4 : index
    %47 = memref.load %arg1[%c4] : memref<32xf32, #tpu.memory_space<smem>>
    %48 = vector.broadcast %47 : f32 to vector<32x512xf32>
    %49 = arith.mulf %0, %48 : vector<32x512xf32>
    %c14 = arith.constant 14 : index
    %50 = memref.load %arg1[%c14] : memref<32xf32, #tpu.memory_space<smem>>
    %51 = vector.broadcast %50 : f32 to vector<32x512xf32>
    %52 = arith.addf %49, %51 : vector<32x512xf32>
    %53 = math.tanh %52 : vector<32x512xf32>
    %c24 = arith.constant 24 : index
    %54 = memref.load %arg1[%c24] : memref<32xf32, #tpu.memory_space<smem>>
    %55 = vector.broadcast %54 : f32 to vector<32x512xf32>
    %56 = arith.mulf %53, %55 : vector<32x512xf32>
    %57 = arith.addf %46, %56 : vector<32x512xf32>
    %c5 = arith.constant 5 : index
    %58 = memref.load %arg1[%c5] : memref<32xf32, #tpu.memory_space<smem>>
    %59 = vector.broadcast %58 : f32 to vector<32x512xf32>
    %60 = arith.mulf %0, %59 : vector<32x512xf32>
    %c15 = arith.constant 15 : index
    %61 = memref.load %arg1[%c15] : memref<32xf32, #tpu.memory_space<smem>>
    %62 = vector.broadcast %61 : f32 to vector<32x512xf32>
    %63 = arith.addf %60, %62 : vector<32x512xf32>
    %64 = math.tanh %63 : vector<32x512xf32>
    %c25 = arith.constant 25 : index
    %65 = memref.load %arg1[%c25] : memref<32xf32, #tpu.memory_space<smem>>
    %66 = vector.broadcast %65 : f32 to vector<32x512xf32>
    %67 = arith.mulf %64, %66 : vector<32x512xf32>
    %68 = arith.addf %57, %67 : vector<32x512xf32>
    %c6 = arith.constant 6 : index
    %69 = memref.load %arg1[%c6] : memref<32xf32, #tpu.memory_space<smem>>
    %70 = vector.broadcast %69 : f32 to vector<32x512xf32>
    %71 = arith.mulf %0, %70 : vector<32x512xf32>
    %c16 = arith.constant 16 : index
    %72 = memref.load %arg1[%c16] : memref<32xf32, #tpu.memory_space<smem>>
    %73 = vector.broadcast %72 : f32 to vector<32x512xf32>
    %74 = arith.addf %71, %73 : vector<32x512xf32>
    %75 = math.tanh %74 : vector<32x512xf32>
    %c26 = arith.constant 26 : index
    %76 = memref.load %arg1[%c26] : memref<32xf32, #tpu.memory_space<smem>>
    %77 = vector.broadcast %76 : f32 to vector<32x512xf32>
    %78 = arith.mulf %75, %77 : vector<32x512xf32>
    %79 = arith.addf %68, %78 : vector<32x512xf32>
    %c7 = arith.constant 7 : index
    %80 = memref.load %arg1[%c7] : memref<32xf32, #tpu.memory_space<smem>>
    %81 = vector.broadcast %80 : f32 to vector<32x512xf32>
    %82 = arith.mulf %0, %81 : vector<32x512xf32>
    %c17 = arith.constant 17 : index
    %83 = memref.load %arg1[%c17] : memref<32xf32, #tpu.memory_space<smem>>
    %84 = vector.broadcast %83 : f32 to vector<32x512xf32>
    %85 = arith.addf %82, %84 : vector<32x512xf32>
    %86 = math.tanh %85 : vector<32x512xf32>
    %c27 = arith.constant 27 : index
    %87 = memref.load %arg1[%c27] : memref<32xf32, #tpu.memory_space<smem>>
    %88 = vector.broadcast %87 : f32 to vector<32x512xf32>
    %89 = arith.mulf %86, %88 : vector<32x512xf32>
    %90 = arith.addf %79, %89 : vector<32x512xf32>
    %c8 = arith.constant 8 : index
    %91 = memref.load %arg1[%c8] : memref<32xf32, #tpu.memory_space<smem>>
    %92 = vector.broadcast %91 : f32 to vector<32x512xf32>
    %93 = arith.mulf %0, %92 : vector<32x512xf32>
    %c18 = arith.constant 18 : index
    %94 = memref.load %arg1[%c18] : memref<32xf32, #tpu.memory_space<smem>>
    %95 = vector.broadcast %94 : f32 to vector<32x512xf32>
    %96 = arith.addf %93, %95 : vector<32x512xf32>
    %97 = math.tanh %96 : vector<32x512xf32>
    %c28 = arith.constant 28 : index
    %98 = memref.load %arg1[%c28] : memref<32xf32, #tpu.memory_space<smem>>
    %99 = vector.broadcast %98 : f32 to vector<32x512xf32>
    %100 = arith.mulf %97, %99 : vector<32x512xf32>
    %101 = arith.addf %90, %100 : vector<32x512xf32>
    %c9 = arith.constant 9 : index
    %102 = memref.load %arg1[%c9] : memref<32xf32, #tpu.memory_space<smem>>
    %103 = vector.broadcast %102 : f32 to vector<32x512xf32>
    %104 = arith.mulf %0, %103 : vector<32x512xf32>
    %c19 = arith.constant 19 : index
    %105 = memref.load %arg1[%c19] : memref<32xf32, #tpu.memory_space<smem>>
    %106 = vector.broadcast %105 : f32 to vector<32x512xf32>
    %107 = arith.addf %104, %106 : vector<32x512xf32>
    %108 = math.tanh %107 : vector<32x512xf32>
    %c29 = arith.constant 29 : index
    %109 = memref.load %arg1[%c29] : memref<32xf32, #tpu.memory_space<smem>>
    %110 = vector.broadcast %109 : f32 to vector<32x512xf32>
    %111 = arith.mulf %108, %110 : vector<32x512xf32>
    %112 = arith.addf %101, %111 : vector<32x512xf32>
    %113 = math.tanh %112 : vector<32x512xf32>
    %cst = arith.constant 5.000000e-01 : f32
    %114 = vector.broadcast %cst : f32 to vector<32x512xf32>
    %115 = arith.mulf %114, %113 : vector<32x512xf32>
    %cst_2 = arith.constant 5.000000e-01 : f32
    %116 = vector.broadcast %cst_2 : f32 to vector<32x512xf32>
    %117 = arith.addf %115, %116 : vector<32x512xf32>
    %c0_3 = arith.constant 0 : index
    %c0_4 = arith.constant 0 : index
    %118 = vector.load %arg3[%c0_3, %c0_4] : memref<32x512xf32, #tpu.memory_space<vmem>>, vector<32x512xf32>
    tpu.vector_store %arg3[%c0_3, %c0_4], %117 {strides = array<i32>} : memref<32x512xf32, #tpu.memory_space<vmem>>, vector<32x512xf32>,
    return
  }
  func.func @transform_0(%arg0: i32) -> i32 {
    %c0_i32 = arith.constant 0 : i32
    %c0_i32_0 = arith.constant 0 : i32
    return %c0_i32 : i32
  }
  func.func @transform_1(%arg0: i32) -> (i32, i32) {
    %c0_i32 = arith.constant 0 : i32
    %c0_i32_0 = arith.constant 0 : i32
    return %arg0, %c0_i32 : i32, i32
  }
  func.func @transform_2(%arg0: i32) -> (i32, i32) {
    %c0_i32 = arith.constant 0 : i32
    %c0_i32_0 = arith.constant 0 : i32
    return %arg0, %c0_i32 : i32, i32
  }
}

</mosaic_0001>

<bundles_post_ra>
// kernel: tpu_custom_call.1
= control target key start
LH: loop header
LB: loop body
LE: loop exit
PB: predicated region body
PF: predicated region fallthrough
CT: control target
= control target key end

     0   :  { %7 = vsyncpa [#allocation5], 0  ;;  %s2821_s0 = inlined_call_operand.hbm [shape: f32[32], index: 0, kind: input, shape index: {}]   ;;  %s2822_s1 = inlined_call_operand.hbm [shape: f32[256,512], index: 1, kind: input, shape index: {}]   ;;  %s2823_s2 = inlined_call_operand.hbm [shape: f32[256,512], index: 2, kind: output, shape index: {}]  }
   0x1   :  { %8 = vsyncpa [#allocation3], 0 }
   0x2   :  { %10 = vsyncpa [#allocation3 + $0x1], 0 }
   0x3   :  { %11 = vsyncpa [#allocation4], 0 }
   0x4   :  { %13 = vsyncpa [#allocation4 + $0x1], 0  ;;  %s1827_s9 = smov 0   ;;  %s1829_s10 = smov 0  }
   0x5   :  { %s1831_s11 = smov 0   ;;  %s1833_s12 = smov 0  }
   0x6 LB: > { %s1848_s13 = sadd.s32 4294967295, %s1805_s12   ;;  %s1225_s14 = sadd.s32 4294967294, %s1805_s12   ;;  %s1805_s12 = sphi %s1833_s12, %s2833_s12   ;;  %s1801_s11 = sphi %s1831_s11, %s2832_s11   ;;  %s1797_s10 = sphi %s1829_s10, %s2831_s10   ;;  %s1793_s9 = sphi %s1827_s9, %s2830_s9  }
   0x7   : > { %s1852_s15 = sadd.s32 1, %s1805_s12   ;;  %s47_s16 = sadd.s32 1, %s1801_s11 }
   0x8   : > { %s44_s17 = ssub.s32 %s1805_s12, %s1852_s15  ;;  %p54_p0 = scmp.ne.s32.totalorder %s1801_s11, %s1797_s10 }
   0x9   : > { %p45_p1 = scmp.eq.s32.totalorder %s44_s17, 0  ;;  %p55_p2 = scmp.eq.s32.totalorder %s1805_s12, 0 }
   0xa   : > { %p60_p3 = scmp.ne.s32.totalorder %s1797_s10, %s1793_s9  ;;  %p61_p4 = scmp.eq.s32.totalorder %s1848_s13, 0 }
   0xb   : > { %s1864_s18 = scalar_select %p45_p1, %s1801_s11, %s47_s16  }
   0xc   : > { %p1866_p5 = por %p55_p2, %p54_p0  ;;  %p1872_p6 = por %p61_p4, %p60_p3 }
   0xd   : > { %p84_p7 = scmp.eq.s32.totalorder %s1848_s13, 7  ;;  %p90_p8 = scmp.eq.s32.totalorder %s1225_s14, 7 }
   0xe   : > { %p1226_p9 = scmp.ge.s32.totalorder %s1805_s12, 1  ;;  %p97_p10 = scmp.lt.s32.totalorder %s1805_s12, 9 }
   0xf   : > { %p1879_p11 = por %p84_p7, %p54_p0  ;;  %p1883_p12 = por %p90_p8, %p60_p3 }
  0x10   : > { %p1887_p13 = pnand %p1226_p9, %p97_p10  ;;  %s109_s26 = sshll.u32 %s2821_s0, 4  ;;  %s110_s26 = int_to_ptr.hbm [resolvable:$true] %s109_s26 }
  0x11   : > { %p1298_p0 = scmp.lt.s32.totalorder %s1805_s12, 8  ;;  %s120_s27 = sand.u32 1, %s1801_s11  }
  0x12   : > { %p1285_p1 = pneg %p1887_p13  ;;  %s1229_s29 = sshll.u32 %s120_s27, 7 }
  0x13   : > { %p1902_p3 = pnand %p1298_p0, %p1866_p5  ;;  %s1807_s30 = smov [#allocation2]  }
  0x14   : > { %p1286_p2 = pnand %p1285_p1, %p61_p4  ;;  %s1274_s3 = sshll.u32 %s1805_s12, 7 }
  0x15   : > { %s124_s4 = scalar_lea.vmem [#allocation6], %s1229_s29  ;;  %s130_s8 = scalar_lea.hbm %s2822_s1, %s1274_s3 }
  0x16   : > { %1288 = dma.hbm_to_smem (!%p1286_p2), %s110_s26, 16, %s1807_s30, [#allocation5]  }
  0x17   : > { %s133_s5 = sshll.u32 %s124_s4, 4  ;;  %s131_s14 = sshll.u32 %s130_s8, 4  ;;  %s134_s5 = int_to_ptr.vmem [resolvable:$true] %s133_s5  ;;  %s132_s14 = int_to_ptr.hbm [resolvable:$true] %s131_s14 }
  0x18   : > { %s121_s16 = scalar_lea.sflag [#allocation3], %s120_s27  ;;  %s1705_s17 = sshra.s32 %s132_s14, 4  ;;  %s1706_s17 = int_to_ptr.hbm [resolvable:$true] %s1705_s17 }
  0x19   : > { %s1707_s19 = scalar_lea.hbm %s1706_s17, 128  ;;  %p1709_p7 = pneg %p1902_p3 }
  0x1a   : > { %p1708_p5 = scmp.ne.s32.totalorder %s1706_s17, %s1707_s19  ;;  %s1712_s26 = scalar_lea.hbm %s2822_s1, 1024 }
  0x1b   : > { %p1713_p10 = scmp.lt.s32.totalorder %s1706_s17, %s2822_s1  ;;  %p1714_p1 = scmp.lt.s32.totalorder %s1712_s26, %s1707_s19 }
  0x1c   : > { %p1710_p8 = pnand %p1709_p7, %p1708_p5 }
  0x1d   : > { %p1715_p0 = por %p1714_p1, %p1713_p10 }
  0x1e   : > { %p1711_p9 = pneg %p1710_p8 }
  0x20   : > { %p1716_p2 = pnand %p1715_p0, %p1711_p9 }
  0x22   : > { %1719 = shalt.err (!%p1716_p2)
}
  0x23   : > { %s1808_s27 = smov 512   ;;  %s1809_s3 = smov 32  }
  0x24   : > { %1292 = dma.hbm_to_vmem [thread:$0]  (!%p1902_p3), %s132_s14, 2048, %s134_s5, %s121_s16, %s1808_s27, %s1808_s27, %s1809_s3  }
  0x25   : > { %145 = sbr.rel (%p1887_p13) target bundleno = 303 (0x12f), region = 28 }
  0x2a   : > { %1780 = dma.done.wait (%p61_p4), [#allocation5], 16  }
  0x2b   : > { %1782 = vsyncadd (%p61_p4), [#allocation5], 4294967280  ;;  %s1927_s4 = sand.u32 1, %s1797_s10  }
  0x2c   : > { %s1235_s6 = sshll.u32 %s1927_s4, 7  ;;  %s153_s7 = scalar_lea.sflag [#allocation3], %s1927_s4 }
  0x2d   : > { %s1933_s28 = scalar_lea.vmem [#allocation6], %s1235_s6 }
  0x2e   : > { %1784 = dma.done.wait (%p1872_p6), %s153_s7, 2048  }
  0x2f   : > { %1786 = vsyncadd (%p1872_p6), %s153_s7, 4294965248 }
  0x30   : > { %162 = sfence }
  0x31   : > { %s197_s23 = sld [smem:[#allocation2]]  ;;  %v1940_v0 = vld [vmem:[%s1933_s28] sm:$0xff]  ;;  %v1943_v1 = vld [vmem:[%s1933_s28 + $0x8] sm:$0xff]  ;;  %v1946_v2 = vld [vmem:[%s1933_s28 + $0x10] sm:$0xff] }
  0x32   : > { %s1237_s5 = sld [smem:[#allocation2 + $0xa]]  ;;  %v1949_v3 = vld [vmem:[%s1933_s28 + $0x18] sm:$0xff] }
  0x33   : > { %s1238_s8 = sld [smem:[#allocation2 + $0x14]] }
  0x34   : > { %s1239_s14 = sld [smem:[#allocation2 + $0x1e]] }
  0x35   : > { %s1240_s16 = sld [smem:[#allocation2 + $0x1]] }
  0x36   : > { %s1241_s17 = sld [smem:[#allocation2 + $0xb]] }
  0x37   : > { %v1951_v4 = vstv %s197_s23  ;;  %s1953_s20 = sld [smem:[#allocation2 + $0x15]] }
  0x38   : > { %v199_v5 = vmul.f32 %v1951_v4, %v1940_v0  ;;  %v1957_v6 = vstv %s1237_s5  ;;  %s1243_s19 = sld [smem:[#allocation2 + $0x2]]  ;;  %v200_v7 = vmul.f32 %v1951_v4, %v1943_v1  ;;  %v201_v8 = vmul.f32 %v1951_v4, %v1946_v2 }
  0x39   : > { %s1244_s24 = sld [smem:[#allocation2 + $0xc]]  ;;  %v202_v9 = vmul.f32 %v1951_v4, %v1949_v3  ;;  %v1968_v13 = vstv %s1238_s8 }
  0x3a   : > { %v217_v10 = vadd.f32 %v1957_v6, %v199_v5  ;;  %s1245_s25 = sld [smem:[#allocation2 + $0x16]]  ;;  %v218_v11 = vadd.f32 %v1957_v6, %v200_v7  ;;  %v219_v12 = vadd.f32 %v1957_v6, %v201_v8  ;;  %v1978_v18 = vstv %s1239_s14 }
  0x3b   : > { %v1970_v14 = vstv %s1240_s16  ;;  %s1246_s26 = sld [smem:[#allocation2 + $0x3]]  ;;  %v1985_v20 = vadd.f32 %v1957_v6, %v202_v9 }
  0x3c   : > { %1338 = vtanh.f32 %v217_v10  ;;  %v287_v15 = vmul.f32 %v1970_v14, %v1940_v0  ;;  %v1974_v16 = vstv %s1241_s17  ;;  %s1247_s29 = sld [smem:[#allocation2 + $0xd]]  ;;  %v288_v17 = vmul.f32 %v1970_v14, %v1943_v1 }
  0x3d   : > { %s1980_s30 = sld [smem:[#allocation2 + $0x17]]  ;;  %1340 = vtanh.f32 %v218_v11  ;;  %v289_v19 = vmul.f32 %v1970_v14, %v1946_v2  ;;  %v2003_v28 = vstv %s1953_s20 }
  0x3e   : > { %v305_v21 = vadd.f32 %v1974_v16, %v287_v15  ;;  %v1988_v22 = vstv %s1243_s19  ;;  %s1990_s27 = sld [smem:[#allocation2 + $0x4]]  ;;  %v306_v23 = vadd.f32 %v1974_v16, %v288_v17  ;;  %1342 = vtanh.f32 %v219_v12 }
  0x3f   : > { %v373_v24 = vmul.f32 %v1988_v22, %v1940_v0  ;;  %v1995_v25 = vstv %s1244_s24  ;;  %s1997_s3 = sld [smem:[#allocation2 + $0xe]]  ;;  %v374_v26 = vmul.f32 %v1988_v22, %v1943_v1  ;;  %v307_v27 = vadd.f32 %v1974_v16, %v289_v19 }
  0x40   : > { %1344 = vtanh.f32 %v305_v21  ;;  %v2005_v29 = vstv %s1245_s25  ;;  %s2007_s7 = sld [smem:[#allocation2 + $0x18]]  ;;  %v375_v30 = vmul.f32 %v1988_v22, %v1946_v2 }
  0x41   : > { %v391_v31 = vadd.f32 %v1995_v25, %v373_v24  ;;  %v2012_v32 = vstv %s1246_s26  ;;  %s2014_s23 = sld [smem:[#allocation2 + $0x5]]  ;;  %1346 = vtanh.f32 %v306_v23  ;;  %v392_v33 = vadd.f32 %v1995_v25, %v374_v26 }
  0x42   : > { %v1339_v34 = vpop.eup %1338  ;;  %v459_v35 = vmul.f32 %v2012_v32, %v1940_v0  ;;  %v2019_v36 = vstv %s1247_s29  ;;  %s2021_s5 = sld [smem:[#allocation2 + $0xf]]  ;;  %v460_v37 = vmul.f32 %v2012_v32, %v1943_v1  ;;  %1348 = vtanh.f32 %v307_v27 }
  0x43   : > { %v1341_v38 = vpop.eup %1340  ;;  %v251_v39 = vmul.f32 %v1339_v34, %v1968_v13  ;;  %1350 = vtanh.f32 %v391_v31  ;;  %v2027_v40 = vstv %s1980_s30  ;;  %s2029_s8 = sld [smem:[#allocation2 + $0x19]]  ;;  %v2032_v41 = vadd.f32 %v1995_v25, %v375_v30 }
  0x44   : > { %v2034_v42 = vpop.eup %1342  ;;  %v477_v43 = vadd.f32 %v2019_v36, %v459_v35  ;;  %v2038_v44 = vstv %s1990_s27  ;;  %s2040_s14 = sld [smem:[#allocation2 + $0x6]]  ;;  %v252_v45 = vmul.f32 %v1341_v38, %v1968_v13  ;;  %1352 = vtanh.f32 %v392_v33 }
  0x45   : > { %v269_v46 = vadd.f32 %v1978_v18, %v251_v39  ;;  %v545_v47 = vmul.f32 %v2038_v44, %v1940_v0  ;;  %v2047_v48 = vstv %s1997_s3  ;;  %s2049_s16 = sld [smem:[#allocation2 + $0x10]]  ;;  %v478_v49 = vadd.f32 %v2019_v36, %v460_v37 }
  0x46   : > { %v1345_v50 = vpop.eup %1344  ;;  %1354 = vtanh.f32 %v477_v43  ;;  %v2053_v51 = vstv %s2007_s7  ;;  %s2055_s17 = sld [smem:[#allocation2 + $0x1a]]  ;;  %v270_v52 = vadd.f32 %v1978_v18, %v252_v45  ;;  %v546_v53 = vmul.f32 %v2038_v44, %v1943_v1  ;;  %s2236_s7 = scalar_lea.vmem [#allocation7], %s1235_s6 }
  0x47   : > { %v1347_v54 = vpop.eup %1346  ;;  %v339_v55 = vmul.f32 %v1345_v50, %v2003_v28  ;;  %v563_v56 = vadd.f32 %v2047_v48, %v545_v47  ;;  %v2063_v57 = vstv %s2014_s23  ;;  %s2065_s20 = sld [smem:[#allocation2 + $0x7]]  ;;  %1356 = vtanh.f32 %v478_v49  ;;  %s1276_s6 = sshll.u32 %s1848_s13, 7 }
  0x48   : > { %v2067_v58 = vpop.eup %1348  ;;  %v631_v59 = vmul.f32 %v2063_v57, %v1940_v0  ;;  %v2072_v60 = vstv %s2021_s5  ;;  %s2074_s19 = sld [smem:[#allocation2 + $0x11]]  ;;  %v340_v61 = vmul.f32 %v1347_v54, %v2003_v28  ;;  %v564_v62 = vadd.f32 %v2047_v48, %v546_v53  ;;  %s1136_s5 = scalar_lea.hbm %s2823_s2, %s1276_s6 }
  0x49   : > { %v1351_v63 = vpop.eup %1350  ;;  %v355_v5 = vadd.f32 %v339_v55, %v269_v46  ;;  %1358 = vtanh.f32 %v563_v56  ;;  %v2079_v7 = vstv %s2029_s8  ;;  %s2081_s24 = sld [smem:[#allocation2 + $0x1b]]  ;;  %v632_v8 = vmul.f32 %v2063_v57, %v1943_v1  ;;  %s1137_s8 = sshll.u32 %s2236_s7, 4  ;;  %s1138_s8 = int_to_ptr.vmem [resolvable:$true] %s1137_s8 }
  0x4a   : > { %v1353_v9 = vpop.eup %1352  ;;  %v425_v10 = vmul.f32 %v1351_v63, %v2005_v29  ;;  %v649_v11 = vadd.f32 %v2072_v60, %v631_v59  ;;  %v2088_v12 = vstv %s2040_s14  ;;  %s2090_s25 = sld [smem:[#allocation2 + $0x8]]  ;;  %v356_v15 = vadd.f32 %v340_v61, %v270_v52  ;;  %s1139_s14 = sshll.u32 %s1136_s5, 4  ;;  %s1140_s14 = int_to_ptr.hbm [resolvable:$true] %s1139_s14 }
  0x4b   : > { %v717_v17 = vmul.f32 %v2088_v12, %v1940_v0  ;;  %v2095_v19 = vstv %s2049_s16  ;;  %s2097_s26 = sld [smem:[#allocation2 + $0x12]]  ;;  %v426_v21 = vmul.f32 %v1353_v9, %v2005_v29  ;;  %1360 = vtanh.f32 %v564_v62  ;;  %s1124_s16 = scalar_lea.sflag [#allocation4], %s1927_s4 }
  0x4c   : > { %v1355_v23 = vpop.eup %1354  ;;  %v441_v24 = vadd.f32 %v425_v10, %v355_v5  ;;  %1362 = vtanh.f32 %v649_v11  ;;  %v2101_v26 = vstv %s2055_s17  ;;  %s2103_s29 = sld [smem:[#allocation2 + $0x1c]]  ;;  %v650_v27 = vadd.f32 %v2072_v60, %v632_v8  ;;  %s1749_s17 = sshra.s32 %s1140_s14, 4  ;;  %s1750_s17 = int_to_ptr.hbm [resolvable:$true] %s1749_s17 }
  0x4d   : > { %v1357_v30 = vpop.eup %1356  ;;  %v511_v31 = vmul.f32 %v1355_v23, %v2027_v40  ;;  %v735_v33 = vadd.f32 %v2095_v19, %v717_v17  ;;  %v2109_v34 = vstv %s2065_s20  ;;  %s1264_s30 = sld [smem:[#allocation2 + $0x9]]  ;;  %v442_v35 = vadd.f32 %v426_v21, %v356_v15  ;;  %s1751_s20 = scalar_lea.hbm %s1750_s17, 128 }
  0x4e   : > { %v803_v37 = vmul.f32 %v2109_v34, %v1940_v0  ;;  %v2114_v38 = vstv %s2074_s19  ;;  %s1265_s27 = sld [smem:[#allocation2 + $0x13]]  ;;  %v512_v39 = vmul.f32 %v1357_v30, %v2027_v40  ;;  %1364 = vtanh.f32 %v650_v27  ;;  %p1752_p4 = scmp.ne.s32.totalorder %s1750_s17, %s1751_s20 }
  0x4f   : > { %v1359_v43 = vpop.eup %1358  ;;  %v527_v45 = vadd.f32 %v511_v31, %v441_v24  ;;  %1366 = vtanh.f32 %v735_v33  ;;  %v2118_v46 = vstv %s2081_s24  ;;  %s1266_s3 = sld [smem:[#allocation2 + $0x1d]]  ;;  %v718_v47 = vmul.f32 %v2088_v12, %v1943_v1  ;;  %s1755_s24 = scalar_lea.hbm %s2823_s2, 1024 }
  0x50   : > { %v597_v49 = vmul.f32 %v1359_v43, %v2053_v51  ;;  %v821_v50 = vadd.f32 %v2114_v38, %v803_v37  ;;  %v2125_v52 = vstv %s2090_s25  ;;  %v528_v53 = vadd.f32 %v512_v39, %v442_v35  ;;  %p1753_p6 = pnand %p1752_p4, %p1879_p11  ;;  %p1756_p3 = scmp.lt.s32.totalorder %s1750_s17, %s2823_s2 }
  0x51   : > { %v1361_v54 = vpop.eup %1360  ;;  %v889_v55 = vmul.f32 %v2125_v52, %v1940_v0  ;;  %v2130_v56 = vstv %s2097_s26  ;;  %v736_v59 = vadd.f32 %v2095_v19, %v718_v47  ;;  %v804_v61 = vmul.f32 %v2109_v34, %v1943_v1  ;;  %p1757_p5 = scmp.lt.s32.totalorder %s1755_s24, %s1751_s20 }
  0x52   : > { %v1363_v62 = vpop.eup %1362  ;;  %v613_v63 = vadd.f32 %v597_v49, %v527_v45  ;;  %1368 = vtanh.f32 %v821_v50  ;;  %v2136_v5 = vstv %s2103_s29  ;;  %v598_v8 = vmul.f32 %v1361_v54, %v2053_v51  ;;  %p1754_p13 = pneg %p1753_p6 }
  0x53   : > { %v683_v9 = vmul.f32 %v1363_v62, %v2079_v7  ;;  %v907_v10 = vadd.f32 %v2130_v56, %v889_v55  ;;  %v2141_v11 = vstv %s1264_s30  ;;  %1370 = vtanh.f32 %v736_v59  ;;  %p1758_p7 = por %p1757_p5, %p1756_p3 }
  0x54   : > { %v1365_v15 = vpop.eup %1364  ;;  %v975_v17 = vmul.f32 %v2141_v11, %v1940_v0  ;;  %v2145_v21 = vstv %s1265_s27  ;;  %v614_v23 = vadd.f32 %v598_v8, %v528_v53  ;;  %v822_v24 = vadd.f32 %v2114_v38, %v804_v61 }
  0x55   : > { %v1367_v27 = vpop.eup %1366  ;;  %v699_v30 = vadd.f32 %v683_v9, %v613_v63  ;;  %1372 = vtanh.f32 %v907_v10  ;;  %v2148_v31 = vstv %s1266_s3  ;;  %v684_v33 = vmul.f32 %v1365_v15, %v2079_v7  ;;  %p1759_p8 = pnand %p1758_p7, %p1754_p13 }
  0x56   : > { %v769_v35 = vmul.f32 %v1367_v27, %v2101_v26  ;;  %v993_v37 = vadd.f32 %v2145_v21, %v975_v17  ;;  %1374 = vtanh.f32 %v822_v24  ;;  %v890_v0 = vmul.f32 %v2125_v52, %v1943_v1 }
  0x57   : > { %v700_v39 = vadd.f32 %v684_v33, %v614_v23  ;;  %v976_v43 = vmul.f32 %v2141_v11, %v1943_v1  ;;  %v253_v45 = vmul.f32 %v2034_v42, %v1968_v13  ;;  %v341_v47 = vmul.f32 %v2067_v58, %v2003_v28 }
  0x58   : > { %v1369_v49 = vpop.eup %1368  ;;  %v785_v50 = vadd.f32 %v769_v35, %v699_v30  ;;  %1376 = vtanh.f32 %v993_v37  ;;  %v908_v53 = vadd.f32 %v2130_v56, %v890_v0  ;;  %v461_v54 = vmul.f32 %v2012_v32, %v1946_v2 }
  0x59   : > { %v1371_v55 = vpop.eup %1370  ;;  %v855_v59 = vmul.f32 %v1369_v49, %v2118_v46  ;;  %v994_v61 = vadd.f32 %v2145_v21, %v976_v43  ;;  %v271_v1 = vadd.f32 %v1978_v18, %v253_v45  ;;  %1378 = vtanh.f32 %v2032_v41 }
  0x5a   : > { %v770_v42 = vmul.f32 %v1371_v55, %v2101_v26  ;;  %1380 = vtanh.f32 %v908_v53  ;;  %v479_v58 = vadd.f32 %v2019_v36, %v461_v54  ;;  %v547_v62 = vmul.f32 %v2038_v44, %v1946_v2 }
  0x5b   : > { %v1373_v63 = vpop.eup %1372  ;;  %v871_v8 = vadd.f32 %v855_v59, %v785_v50  ;;  %1382 = vtanh.f32 %v994_v61  ;;  %v357_v9 = vadd.f32 %v341_v47, %v271_v1  ;;  %v633_v10 = vmul.f32 %v2063_v57, %v1946_v2 }
  0x5c   : > { %v1375_v15 = vpop.eup %1374  ;;  %v941_v17 = vmul.f32 %v1373_v63, %v2136_v5  ;;  %v786_v23 = vadd.f32 %v770_v42, %v700_v39  ;;  %1384 = vtanh.f32 %v479_v58  ;;  %v565_v41 = vadd.f32 %v2047_v48, %v547_v62 }
  0x5d   : > { %v856_v24 = vmul.f32 %v1375_v15, %v2118_v46  ;;  %v651_v27 = vadd.f32 %v2072_v60, %v633_v10  ;;  %v719_v30 = vmul.f32 %v2088_v12, %v1946_v2  ;;  %v805_v33 = vmul.f32 %v2109_v34, %v1946_v2 }
  0x5e   : > { %v1377_v35 = vpop.eup %1376  ;;  %v957_v37 = vadd.f32 %v941_v17, %v871_v8  ;;  %1386 = vtanh.f32 %v565_v41  ;;  %v891_v0 = vmul.f32 %v2125_v52, %v1946_v2  ;;  %v977_v39 = vmul.f32 %v2141_v11, %v1946_v2 }
  0x5f   : > { %v1379_v43 = vpop.eup %1378  ;;  %v1027_v45 = vmul.f32 %v1377_v35, %v2148_v31  ;;  %v872_v47 = vadd.f32 %v856_v24, %v786_v23  ;;  %1388 = vtanh.f32 %v651_v27  ;;  %v737_v49 = vadd.f32 %v2095_v19, %v719_v30 }
  0x60   : > { %v1381_v50 = vpop.eup %1380  ;;  %v427_v53 = vmul.f32 %v1379_v43, %v2005_v29  ;;  %v823_v54 = vadd.f32 %v2114_v38, %v805_v33  ;;  %v909_v55 = vadd.f32 %v2130_v56, %v891_v0  ;;  %v995_v59 = vadd.f32 %v2145_v21, %v977_v39 }
  0x61   : > { %v1383_v61 = vpop.eup %1382  ;;  %v1043_v1 = vadd.f32 %v1027_v45, %v957_v37  ;;  %v942_v2 = vmul.f32 %v1381_v50, %v2136_v5  ;;  %1390 = vtanh.f32 %v737_v49  ;;  %v290_v42 = vmul.f32 %v1970_v14, %v1949_v3 }
  0x62   : > { %v1385_v58 = vpop.eup %1384  ;;  %v1028_v62 = vmul.f32 %v1383_v61, %v2148_v31  ;;  %v443_v63 = vadd.f32 %v427_v53, %v357_v9  ;;  %1392 = vtanh.f32 %v823_v54  ;;  %v376_v8 = vmul.f32 %v1988_v22, %v1949_v3 }
  0x63   : > { %1394 = vtanh.f32 %v1043_v1  ;;  %v958_v10 = vadd.f32 %v942_v2, %v872_v47  ;;  %v513_v15 = vmul.f32 %v1385_v58, %v2027_v40  ;;  %v308_v17 = vadd.f32 %v1974_v16, %v290_v42 }
  0x64   : > { %v1387_v23 = vpop.eup %1386  ;;  %1396 = vtanh.f32 %v909_v55  ;;  %v394_v41 = vadd.f32 %v1995_v25, %v376_v8  ;;  %v462_v24 = vmul.f32 %v2012_v32, %v1949_v3  ;;  %v548_v9 = vmul.f32 %v2038_v44, %v1949_v3 }
  0x65   : > { %v1389_v27 = vpop.eup %1388  ;;  %v1044_v30 = vadd.f32 %v1028_v62, %v958_v10  ;;  %v529_v33 = vadd.f32 %v513_v15, %v443_v63  ;;  %v599_v35 = vmul.f32 %v1387_v23, %v2053_v51  ;;  %1398 = vtanh.f32 %v995_v59  ;;  %v2224_v63 = vld [vmem:[%s1933_s28 + $0x20] sm:$0xff] }
  0x66   : > { %v685_v37 = vmul.f32 %v1389_v27, %v2079_v7  ;;  %1400 = vtanh.f32 %v1985_v20  ;;  %v480_v0 = vadd.f32 %v2019_v36, %v462_v24  ;;  %v566_v39 = vadd.f32 %v2047_v48, %v548_v9 }
  0x67   : > { %v1391_v43 = vpop.eup %1390  ;;  %1402 = vtanh.f32 %v1044_v30  ;;  %v615_v45 = vadd.f32 %v599_v35, %v529_v33  ;;  %v634_v47 = vmul.f32 %v2063_v57, %v1949_v3  ;;  %v720_v49 = vmul.f32 %v2088_v12, %v1949_v3 }
  0x68   : > { %v1393_v50 = vpop.eup %1392  ;;  %v771_v53 = vmul.f32 %v1391_v43, %v2101_v26  ;;  %1404 = vtanh.f32 %v308_v17  ;;  %v806_v20 = vmul.f32 %v2109_v34, %v1949_v3  ;;  %v892_v54 = vmul.f32 %v2125_v52, %v1949_v3 }
  0x69   : > { %v1395_v55 = vpop.eup %1394  ;;  %v701_v59 = vadd.f32 %v685_v37, %v615_v45  ;;  %v857_v61 = vmul.f32 %v1393_v50, %v2118_v46  ;;  %1406 = vtanh.f32 %v394_v41  ;;  %v652_v1 = vadd.f32 %v2072_v60, %v634_v47 }
  0x6a   : > { %v1397_v2 = vpop.eup %1396  ;;  %v1075_v42 = vmul.f32 0.5, %v1395_v55  ;;  %1408 = vtanh.f32 %v480_v0  ;;  %v738_v58 = vadd.f32 %v2095_v19, %v720_v49  ;;  %v824_v62 = vadd.f32 %v2114_v38, %v806_v20 }
  0x6b   : > { %v1399_v8 = vpop.eup %1398  ;;  %v787_v10 = vadd.f32 %v771_v53, %v701_v59  ;;  %v943_v15 = vmul.f32 %v1397_v2, %v2136_v5  ;;  %1410 = vtanh.f32 %v566_v39  ;;  %v910_v17 = vadd.f32 %v2130_v56, %v892_v54 }
  0x6c   : > { %v1401_v23 = vpop.eup %1400  ;;  %v1091_v41 = vadd.f32 0.5, %v1075_v42  ;;  %v1029_v24 = vmul.f32 %v1399_v8, %v2148_v31  ;;  %1412 = vtanh.f32 %v652_v1  ;;  %v978_v9 = vmul.f32 %v2141_v11, %v1949_v3 }
  0x6d   : > { %v1403_v27 = vpop.eup %1402  ;;  %v873_v30 = vadd.f32 %v857_v61, %v787_v10  ;;  %v254_v33 = vmul.f32 %v1401_v23, %v1968_v13  ;;  %1414 = vtanh.f32 %v738_v58  ;;  %v203_v35 = vmul.f32 %v1951_v4, %v2224_v63 }
  0x6e   : > { %v1405_v37 = vpop.eup %1404  ;;  %1107 = vst [vmem:[%s2236_s7] sm:$0xff] %v1091_v41  ;;  %v1076_v0 = vmul.f32 0.5, %v1403_v27  ;;  %1416 = vtanh.f32 %v824_v62  ;;  %v996_v39 = vadd.f32 %v2145_v21, %v978_v9  ;;  %v291_v3 = vmul.f32 %v1970_v14, %v2224_v63 }
  0x6f   : > { %v1407_v43 = vpop.eup %1406  ;;  %v959_v45 = vadd.f32 %v943_v15, %v873_v30  ;;  %v272_v47 = vadd.f32 %v1978_v18, %v254_v33  ;;  %v342_v49 = vmul.f32 %v1405_v37, %v2003_v28  ;;  %1418 = vtanh.f32 %v910_v17 }
  0x70   : > { %v1409_v50 = vpop.eup %1408  ;;  %v1092_v53 = vadd.f32 0.5, %v1076_v0  ;;  %v428_v20 = vmul.f32 %v1407_v43, %v2005_v29  ;;  %1420 = vtanh.f32 %v996_v39  ;;  %v221_v54 = vadd.f32 %v1957_v6, %v203_v35 }
  0x71   : > { %v1411_v55 = vpop.eup %1410  ;;  %v1045_v59 = vadd.f32 %v1029_v24, %v959_v45  ;;  %v358_v61 = vadd.f32 %v342_v49, %v272_v47  ;;  %v514_v1 = vmul.f32 %v1409_v50, %v2027_v40  ;;  %v309_v2 = vadd.f32 %v1974_v16, %v291_v3 }
  0x72   : > { %v1413_v42 = vpop.eup %1412  ;;  %1108 = vst [vmem:[%s2236_s7 + $0x8] sm:$0xff] %v1092_v53  ;;  %v600_v58 = vmul.f32 %v1411_v55, %v2053_v51  ;;  %1422 = vtanh.f32 %v221_v54  ;;  %v377_v62 = vmul.f32 %v1988_v22, %v2224_v63  ;;  %v463_v8 = vmul.f32 %v2012_v32, %v2224_v63  ;;  %v2272_v53 = vld [vmem:[%s1933_s28 + $0x28] sm:$0xff] }
  0x73   : > { %v1415_v10 = vpop.eup %1414  ;;  %1424 = vtanh.f32 %v1045_v59  ;;  %v444_v15 = vadd.f32 %v428_v20, %v358_v61  ;;  %v686_v17 = vmul.f32 %v1413_v42, %v2079_v7  ;;  %v549_v23 = vmul.f32 %v2038_v44, %v2224_v63 }
  0x74   : > { %v1417_v41 = vpop.eup %1416  ;;  %v772_v24 = vmul.f32 %v1415_v10, %v2101_v26  ;;  %1426 = vtanh.f32 %v309_v2  ;;  %v395_v9 = vadd.f32 %v1995_v25, %v377_v62  ;;  %v481_v27 = vadd.f32 %v2019_v36, %v463_v8 }
  0x75   : > { %v1419_v30 = vpop.eup %1418  ;;  %v530_v33 = vadd.f32 %v514_v1, %v444_v15  ;;  %v858_v35 = vmul.f32 %v1417_v41, %v2118_v46  ;;  %v567_v37 = vadd.f32 %v2047_v48, %v549_v23  ;;  %v635_v0 = vmul.f32 %v2063_v57, %v2224_v63 }
  0x76   : > { %v1421_v39 = vpop.eup %1420  ;;  %v944_v3 = vmul.f32 %v1419_v30, %v2136_v5  ;;  %1428 = vtanh.f32 %v395_v9  ;;  %v721_v43 = vmul.f32 %v2088_v12, %v2224_v63  ;;  %v807_v45 = vmul.f32 %v2109_v34, %v2224_v63 }
  0x77   : > { %v616_v47 = vadd.f32 %v600_v58, %v530_v33  ;;  %v1030_v49 = vmul.f32 %v1421_v39, %v2148_v31  ;;  %1430 = vtanh.f32 %v481_v27  ;;  %v653_v50 = vadd.f32 %v2072_v60, %v635_v0 }
  0x78   : > { %v1423_v20 = vpop.eup %1422  ;;  %1432 = vtanh.f32 %v567_v37  ;;  %v739_v54 = vadd.f32 %v2095_v19, %v721_v43  ;;  %v825_v55 = vadd.f32 %v2114_v38, %v807_v45  ;;  %v893_v59 = vmul.f32 %v2125_v52, %v2224_v63 }
  0x79   : > { %v1425_v61 = vpop.eup %1424  ;;  %v702_v1 = vadd.f32 %v686_v17, %v616_v47  ;;  %v255_v2 = vmul.f32 %v1423_v20, %v1968_v13  ;;  %1434 = vtanh.f32 %v653_v50  ;;  %v979_v42 = vmul.f32 %v2141_v11, %v2224_v63 }
  0x7a   : > { %v1427_v58 = vpop.eup %1426  ;;  %v1077_v62 = vmul.f32 0.5, %v1425_v61  ;;  %1436 = vtanh.f32 %v739_v54  ;;  %v911_v8 = vadd.f32 %v2130_v56, %v893_v59  ;;  %v204_v10 = vmul.f32 %v1951_v4, %v2272_v53 }
  0x7b   : > { %v788_v15 = vadd.f32 %v772_v24, %v702_v1  ;;  %v273_v23 = vadd.f32 %v1978_v18, %v255_v2  ;;  %v343_v17 = vmul.f32 %v1427_v58, %v2003_v28  ;;  %1438 = vtanh.f32 %v825_v55 }
  0x7c   : > { %v1429_v41 = vpop.eup %1428  ;;  %v1093_v9 = vadd.f32 0.5, %v1077_v62  ;;  %1440 = vtanh.f32 %v911_v8  ;;  %v997_v63 = vadd.f32 %v2145_v21, %v979_v42  ;;  %v222_v27 = vadd.f32 %v1957_v6, %v204_v10 }
  0x7d   : > { %v1431_v30 = vpop.eup %1430  ;;  %v874_v33 = vadd.f32 %v858_v35, %v788_v15  ;;  %v359_v37 = vadd.f32 %v343_v17, %v273_v23  ;;  %v429_v0 = vmul.f32 %v1429_v41, %v2005_v29  ;;  %v292_v24 = vmul.f32 %v1970_v14, %v2272_v53 }
  0x7e   : > { %v1433_v39 = vpop.eup %1432  ;;  %1109 = vst [vmem:[%s2236_s7 + $0x10] sm:$0xff] %v1093_v9  ;;  %v515_v43 = vmul.f32 %v1431_v30, %v2027_v40  ;;  %1442 = vtanh.f32 %v997_v63  ;;  %v378_v45 = vmul.f32 %v1988_v22, %v2272_v53  ;;  %v464_v47 = vmul.f32 %v2012_v32, %v2272_v53 }
  0x7f   : > { %v1435_v50 = vpop.eup %1434  ;;  %v960_v20 = vadd.f32 %v944_v3, %v874_v33  ;;  %v445_v35 = vadd.f32 %v429_v0, %v359_v37  ;;  %v601_v54 = vmul.f32 %v1433_v39, %v2053_v51  ;;  %1444 = vtanh.f32 %v222_v27  ;;  %v2317_v37 = vld [vmem:[%s1933_s28 + $0x30] sm:$0xff] }
  0x80   : > { %v1437_v55 = vpop.eup %1436  ;;  %v687_v59 = vmul.f32 %v1435_v50, %v2079_v7  ;;  %v310_v61 = vadd.f32 %v1974_v16, %v292_v24  ;;  %v396_v1 = vadd.f32 %v1995_v25, %v378_v45  ;;  %v482_v2 = vadd.f32 %v2019_v36, %v464_v47 }
  0x81   : > { %v1439_v42 = vpop.eup %1438  ;;  %v1046_v58 = vadd.f32 %v1030_v49, %v960_v20  ;;  %v531_v62 = vadd.f32 %v515_v43, %v445_v35  ;;  %v773_v8 = vmul.f32 %v1437_v55, %v2101_v26  ;;  %v550_v3 = vmul.f32 %v2038_v44, %v2272_v53 }
  0x82   : > { %v1441_v10 = vpop.eup %1440  ;;  %v859_v15 = vmul.f32 %v1439_v42, %v2118_v46  ;;  %1446 = vtanh.f32 %v310_v61  ;;  %v636_v23 = vmul.f32 %v2063_v57, %v2272_v53  ;;  %v722_v17 = vmul.f32 %v2088_v12, %v2272_v53 }
  0x83   : > { %1448 = vtanh.f32 %v1046_v58  ;;  %v617_v41 = vadd.f32 %v601_v54, %v531_v62  ;;  %v945_v49 = vmul.f32 %v1441_v10, %v2136_v5  ;;  %v568_v9 = vadd.f32 %v2047_v48, %v550_v3 }
  0x84   : > { %v1443_v63 = vpop.eup %1442  ;;  %1450 = vtanh.f32 %v396_v1  ;;  %v654_v27 = vadd.f32 %v2072_v60, %v636_v23  ;;  %v740_v30 = vadd.f32 %v2095_v19, %v722_v17  ;;  %v808_v33 = vmul.f32 %v2109_v34, %v2272_v53 }
  0x85   : > { %v1445_v0 = vpop.eup %1444  ;;  %v703_v24 = vadd.f32 %v687_v59, %v617_v41  ;;  %v1031_v39 = vmul.f32 %v1443_v63, %v2148_v31  ;;  %1452 = vtanh.f32 %v482_v2  ;;  %v894_v43 = vmul.f32 %v2125_v52, %v2272_v53 }
  0x86   : > { %v256_v45 = vmul.f32 %v1445_v0, %v1968_v13  ;;  %1454 = vtanh.f32 %v568_v9  ;;  %v826_v47 = vadd.f32 %v2114_v38, %v808_v33  ;;  %v980_v50 = vmul.f32 %v2141_v11, %v2272_v53 }
  0x87   : > { %v789_v20 = vadd.f32 %v773_v8, %v703_v24  ;;  %1456 = vtanh.f32 %v654_v27  ;;  %v912_v35 = vadd.f32 %v2130_v56, %v894_v43  ;;  %v205_v54 = vmul.f32 %v1951_v4, %v2317_v37 }
  0x88   : > { %v1447_v55 = vpop.eup %1446  ;;  %v274_v59 = vadd.f32 %v1978_v18, %v256_v45  ;;  %1458 = vtanh.f32 %v740_v30  ;;  %v998_v61 = vadd.f32 %v2145_v21, %v980_v50  ;;  %v293_v1 = vmul.f32 %v1970_v14, %v2317_v37 }
  0x89   : > { %v1449_v2 = vpop.eup %1448  ;;  %v875_v42 = vadd.f32 %v859_v15, %v789_v20  ;;  %v344_v53 = vmul.f32 %v1447_v55, %v2003_v28  ;;  %1460 = vtanh.f32 %v826_v47  ;;  %v223_v58 = vadd.f32 %v1957_v6, %v205_v54 }
  0x8a   : > { %v1451_v62 = vpop.eup %1450  ;;  %v1078_v8 = vmul.f32 0.5, %v1449_v2  ;;  %1462 = vtanh.f32 %v912_v35  ;;  %v311_v3 = vadd.f32 %v1974_v16, %v293_v1  ;;  %v379_v10 = vmul.f32 %v1988_v22, %v2317_v37 }
  0x8b   : > { %v1453_v23 = vpop.eup %1452  ;;  %v961_v17 = vadd.f32 %v945_v49, %v875_v42  ;;  %v360_v41 = vadd.f32 %v344_v53, %v274_v59  ;;  %v430_v9 = vmul.f32 %v1451_v62, %v2005_v29  ;;  %1464 = vtanh.f32 %v998_v61 }
  0x8c   : > { %v1455_v15 = vpop.eup %1454  ;;  %v1094_v63 = vadd.f32 0.5, %v1078_v8  ;;  %v516_v27 = vmul.f32 %v1453_v23, %v2027_v40  ;;  %1466 = vtanh.f32 %v223_v58  ;;  %v397_v30 = vadd.f32 %v1995_v25, %v379_v10 }
  0x8d   : > { %v1457_v33 = vpop.eup %1456  ;;  %v1047_v0 = vadd.f32 %v1031_v39, %v961_v17  ;;  %v446_v24 = vadd.f32 %v430_v9, %v360_v41  ;;  %v602_v43 = vmul.f32 %v1455_v15, %v2053_v51  ;;  %1468 = vtanh.f32 %v311_v3 }
  0x8e   : > { %v1459_v45 = vpop.eup %1458  ;;  %1110 = vst [vmem:[%s2236_s7 + $0x18] sm:$0xff] %v1094_v63  ;;  %v688_v49 = vmul.f32 %v1457_v33, %v2079_v7  ;;  %1470 = vtanh.f32 %v397_v30  ;;  %v465_v47 = vmul.f32 %v2012_v32, %v2317_v37  ;;  %v551_v50 = vmul.f32 %v2038_v44, %v2317_v37 }
  0x8f   : > { %v1461_v20 = vpop.eup %1460  ;;  %1472 = vtanh.f32 %v1047_v0  ;;  %v532_v35 = vadd.f32 %v516_v27, %v446_v24  ;;  %v774_v39 = vmul.f32 %v1459_v45, %v2101_v26  ;;  %v637_v54 = vmul.f32 %v2063_v57, %v2317_v37  ;;  %v2367_v27 = vld [vmem:[%s1933_s28 + $0x38] sm:$0xff] }
  0x90   : > { %v1463_v55 = vpop.eup %1462  ;;  %v860_v59 = vmul.f32 %v1461_v20, %v2118_v46  ;;  %v483_v61 = vadd.f32 %v2019_v36, %v465_v47  ;;  %v569_v1 = vadd.f32 %v2047_v48, %v551_v50  ;;  %v723_v2 = vmul.f32 %v2088_v12, %v2317_v37 }
  0x91   : > { %v1465_v42 = vpop.eup %1464  ;;  %v618_v53 = vadd.f32 %v602_v43, %v532_v35  ;;  %v946_v58 = vmul.f32 %v1463_v55, %v2136_v5  ;;  %v655_v62 = vadd.f32 %v2072_v60, %v637_v54  ;;  %v809_v8 = vmul.f32 %v2109_v34, %v2317_v37 }
  0x92   : > { %v1467_v3 = vpop.eup %1466  ;;  %v1032_v10 = vmul.f32 %v1465_v42, %v2148_v31  ;;  %1474 = vtanh.f32 %v483_v61  ;;  %v741_v23 = vadd.f32 %v2095_v19, %v723_v2  ;;  %v895_v17 = vmul.f32 %v2125_v52, %v2317_v37 }
  0x93   : > { %v1469_v41 = vpop.eup %1468  ;;  %v704_v9 = vadd.f32 %v688_v49, %v618_v53  ;;  %v257_v15 = vmul.f32 %v1467_v3, %v1968_v13  ;;  %1476 = vtanh.f32 %v569_v1  ;;  %v827_v63 = vadd.f32 %v2114_v38, %v809_v8 }
  0x94   : > { %v1471_v30 = vpop.eup %1470  ;;  %v345_v33 = vmul.f32 %v1469_v41, %v2003_v28  ;;  %1478 = vtanh.f32 %v655_v62  ;;  %v913_v0 = vadd.f32 %v2130_v56, %v895_v17  ;;  %v981_v24 = vmul.f32 %v2141_v11, %v2317_v37 }
  0x95   : > { %v1473_v43 = vpop.eup %1472  ;;  %v790_v45 = vadd.f32 %v774_v39, %v704_v9  ;;  %v275_v49 = vadd.f32 %v1978_v18, %v257_v15  ;;  %v431_v47 = vmul.f32 %v1471_v30, %v2005_v29  ;;  %1480 = vtanh.f32 %v741_v23 }
  0x96   : > { %v1079_v50 = vmul.f32 0.5, %v1473_v43  ;;  %1482 = vtanh.f32 %v827_v63  ;;  %v999_v20 = vadd.f32 %v2145_v21, %v981_v24  ;;  %v206_v35 = vmul.f32 %v1951_v4, %v2367_v27 }
  0x97   : > { %v876_v54 = vadd.f32 %v860_v59, %v790_v45  ;;  %v361_v55 = vadd.f32 %v345_v33, %v275_v49  ;;  %1484 = vtanh.f32 %v913_v0  ;;  %v294_v37 = vmul.f32 %v1970_v14, %v2367_v27 }
  0x98   : > { %v1475_v39 = vpop.eup %1474  ;;  %v1095_v61 = vadd.f32 0.5, %v1079_v50  ;;  %1486 = vtanh.f32 %v999_v20  ;;  %v224_v1 = vadd.f32 %v1957_v6, %v206_v35  ;;  %v380_v2 = vmul.f32 %v1988_v22, %v2367_v27 }
  0x99   : > { %v1477_v42 = vpop.eup %1476  ;;  %v962_v53 = vadd.f32 %v946_v58, %v876_v54  ;;  %v447_v62 = vadd.f32 %v431_v47, %v361_v55  ;;  %v517_v8 = vmul.f32 %v1475_v39, %v2027_v40  ;;  %v312_v59 = vadd.f32 %v1974_v16, %v294_v37 }
  0x9a   : > { %v1479_v3 = vpop.eup %1478  ;;  %1111 = vst [vmem:[%s2236_s7 + $0x20] sm:$0xff] %v1095_v61  ;;  %v603_v23 = vmul.f32 %v1477_v42, %v2053_v51  ;;  %1488 = vtanh.f32 %v224_v1  ;;  %v398_v17 = vadd.f32 %v1995_v25, %v380_v2  ;;  %v466_v41 = vmul.f32 %v2012_v32, %v2367_v27 }
  0x9b   : > { %v1481_v9 = vpop.eup %1480  ;;  %v1048_v15 = vadd.f32 %v1032_v10, %v962_v53  ;;  %v533_v63 = vadd.f32 %v517_v8, %v447_v62  ;;  %v689_v58 = vmul.f32 %v1479_v3, %v2079_v7  ;;  %1490 = vtanh.f32 %v312_v59  ;;  %v2414_v3 = vld [vmem:[%s1933_s28 + $0x40] sm:$0xff] }
  0x9c   : > { %v1483_v30 = vpop.eup %1482  ;;  %v775_v33 = vmul.f32 %v1481_v9, %v2101_v26  ;;  %1492 = vtanh.f32 %v398_v17  ;;  %v484_v0 = vadd.f32 %v2019_v36, %v466_v41  ;;  %v552_v24 = vmul.f32 %v2038_v44, %v2367_v27 }
  0x9d   : > { %v1485_v43 = vpop.eup %1484  ;;  %1494 = vtanh.f32 %v1048_v15  ;;  %v619_v45 = vadd.f32 %v603_v23, %v533_v63  ;;  %v861_v49 = vmul.f32 %v1483_v30, %v2118_v46  ;;  %v638_v10 = vmul.f32 %v2063_v57, %v2367_v27 }
  0x9e   : > { %v1487_v47 = vpop.eup %1486  ;;  %v947_v50 = vmul.f32 %v1485_v43, %v2136_v5  ;;  %1496 = vtanh.f32 %v484_v0  ;;  %v570_v20 = vadd.f32 %v2047_v48, %v552_v24  ;;  %v724_v35 = vmul.f32 %v2088_v12, %v2367_v27 }
  0x9f   : > { %v705_v54 = vadd.f32 %v689_v58, %v619_v45  ;;  %v1033_v55 = vmul.f32 %v1487_v47, %v2148_v31  ;;  %v656_v37 = vadd.f32 %v2072_v60, %v638_v10  ;;  %v810_v39 = vmul.f32 %v2109_v34, %v2367_v27 }
  0xa0   : > { %v1489_v61 = vpop.eup %1488  ;;  %1498 = vtanh.f32 %v570_v20  ;;  %v742_v1 = vadd.f32 %v2095_v19, %v724_v35  ;;  %v896_v2 = vmul.f32 %v2125_v52, %v2367_v27  ;;  %v982_v42 = vmul.f32 %v2141_v11, %v2367_v27 }
  0xa1   : > { %v1491_v53 = vpop.eup %1490  ;;  %v791_v62 = vadd.f32 %v775_v33, %v705_v54  ;;  %v258_v8 = vmul.f32 %v1489_v61, %v1968_v13  ;;  %1500 = vtanh.f32 %v656_v37  ;;  %v828_v59 = vadd.f32 %v2114_v38, %v810_v39 }
  0xa2   : > { %v1493_v23 = vpop.eup %1492  ;;  %v346_v17 = vmul.f32 %v1491_v53, %v2003_v28  ;;  %1502 = vtanh.f32 %v742_v1  ;;  %v914_v41 = vadd.f32 %v2130_v56, %v896_v2  ;;  %v1000_v9 = vadd.f32 %v2145_v21, %v982_v42 }
  0xa3   : > { %v1495_v15 = vpop.eup %1494  ;;  %v877_v63 = vadd.f32 %v861_v49, %v791_v62  ;;  %v276_v27 = vadd.f32 %v1978_v18, %v258_v8  ;;  %v432_v58 = vmul.f32 %v1493_v23, %v2005_v29  ;;  %1504 = vtanh.f32 %v828_v59 }
  0xa4   : > { %v1497_v30 = vpop.eup %1496  ;;  %v1080_v33 = vmul.f32 0.5, %v1495_v15  ;;  %1506 = vtanh.f32 %v914_v41  ;;  %v207_v0 = vmul.f32 %v1951_v4, %v2414_v3  ;;  %v295_v24 = vmul.f32 %v1970_v14, %v2414_v3 }
  0xa5   : > { %v963_v43 = vadd.f32 %v947_v50, %v877_v63  ;;  %v362_v45 = vadd.f32 %v346_v17, %v276_v27  ;;  %v518_v10 = vmul.f32 %v1497_v30, %v2027_v40  ;;  %1508 = vtanh.f32 %v1000_v9 }
  0xa6   : > { %v1499_v49 = vpop.eup %1498  ;;  %v1096_v47 = vadd.f32 0.5, %v1080_v33  ;;  %v225_v20 = vadd.f32 %v1957_v6, %v207_v0  ;;  %v313_v35 = vadd.f32 %v1974_v16, %v295_v24  ;;  %v381_v54 = vmul.f32 %v1988_v22, %v2414_v3  ;;  %v2448_v33 = vld [vmem:[%s1933_s28 + $0x48] sm:$0xff] }
  0xa7   : > { %v1501_v37 = vpop.eup %1500  ;;  %v1049_v39 = vadd.f32 %v1033_v55, %v963_v43  ;;  %v448_v61 = vadd.f32 %v432_v58, %v362_v45  ;;  %v604_v1 = vmul.f32 %v1499_v49, %v2053_v51  ;;  %v467_v50 = vmul.f32 %v2012_v32, %v2414_v3 }
  0xa8   : > { %v1503_v2 = vpop.eup %1502  ;;  %1112 = vst [vmem:[%s2236_s7 + $0x28] sm:$0xff] %v1096_v47  ;;  %v690_v42 = vmul.f32 %v1501_v37, %v2079_v7  ;;  %1510 = vtanh.f32 %v225_v20  ;;  %v399_v53 = vadd.f32 %v1995_v25, %v381_v54  ;;  %v553_v62 = vmul.f32 %v2038_v44, %v2414_v3 }
  0xa9   : > { %v1505_v8 = vpop.eup %1504  ;;  %1512 = vtanh.f32 %v1049_v39  ;;  %v534_v55 = vadd.f32 %v518_v10, %v448_v61  ;;  %v776_v59 = vmul.f32 %v1503_v2, %v2101_v26  ;;  %v485_v23 = vadd.f32 %v2019_v36, %v467_v50 }
  0xaa   : > { %v1507_v17 = vpop.eup %1506  ;;  %v862_v41 = vmul.f32 %v1505_v8, %v2118_v46  ;;  %1514 = vtanh.f32 %v313_v35  ;;  %v571_v9 = vadd.f32 %v2047_v48, %v553_v62  ;;  %v639_v15 = vmul.f32 %v2063_v57, %v2414_v3 }
  0xab   : > { %v1509_v63 = vpop.eup %1508  ;;  %v620_v27 = vadd.f32 %v604_v1, %v534_v55  ;;  %v948_v58 = vmul.f32 %v1507_v17, %v2136_v5  ;;  %1516 = vtanh.f32 %v399_v53  ;;  %v725_v30 = vmul.f32 %v2088_v12, %v2414_v3 }
  0xac   : > { %v1034_v0 = vmul.f32 %v1509_v63, %v2148_v31  ;;  %1518 = vtanh.f32 %v485_v23  ;;  %v657_v24 = vadd.f32 %v2072_v60, %v639_v15  ;;  %v811_v43 = vmul.f32 %v2109_v34, %v2414_v3 }
  0xad   : > { %v706_v45 = vadd.f32 %v690_v42, %v620_v27  ;;  %1520 = vtanh.f32 %v571_v9  ;;  %v743_v10 = vadd.f32 %v2095_v19, %v725_v30  ;;  %v897_v49 = vmul.f32 %v2125_v52, %v2414_v3 }
  0xae   : > { %v1511_v47 = vpop.eup %1510  ;;  %1522 = vtanh.f32 %v657_v24  ;;  %v829_v20 = vadd.f32 %v2114_v38, %v811_v43  ;;  %v983_v35 = vmul.f32 %v2141_v11, %v2414_v3  ;;  %v208_v54 = vmul.f32 %v1951_v4, %v2448_v33 }
  0xaf   : > { %v1513_v37 = vpop.eup %1512  ;;  %v792_v39 = vadd.f32 %v776_v59, %v706_v45  ;;  %v259_v61 = vmul.f32 %v1511_v47, %v1968_v13  ;;  %1524 = vtanh.f32 %v743_v10  ;;  %v915_v1 = vadd.f32 %v2130_v56, %v897_v49 }
  0xb0   : > { %v1515_v50 = vpop.eup %1514  ;;  %v1081_v2 = vmul.f32 0.5, %v1513_v37  ;;  %1526 = vtanh.f32 %v829_v20  ;;  %v1001_v42 = vadd.f32 %v2145_v21, %v983_v35  ;;  %v226_v53 = vadd.f32 %v1957_v6, %v208_v54 }
  0xb1   : > { %v1517_v62 = vpop.eup %1516  ;;  %v878_v3 = vadd.f32 %v862_v41, %v792_v39  ;;  %v277_v8 = vadd.f32 %v1978_v18, %v259_v61  ;;  %v347_v55 = vmul.f32 %v1515_v50, %v2003_v28  ;;  %1528 = vtanh.f32 %v915_v1 }
  0xb2   : > { %v1519_v59 = vpop.eup %1518  ;;  %v1097_v23 = vadd.f32 0.5, %v1081_v2  ;;  %v433_v17 = vmul.f32 %v1517_v62, %v2005_v29  ;;  %1530 = vtanh.f32 %v1001_v42  ;;  %v296_v9 = vmul.f32 %v1970_v14, %v2448_v33 }
  0xb3   : > { %v1521_v15 = vpop.eup %1520  ;;  %v964_v63 = vadd.f32 %v948_v58, %v878_v3  ;;  %v363_v27 = vadd.f32 %v347_v55, %v277_v8  ;;  %v519_v30 = vmul.f32 %v1519_v59, %v2027_v40  ;;  %1532 = vtanh.f32 %v226_v53 }
  0xb4   : > { %v1523_v41 = vpop.eup %1522  ;;  %1113 = vst [vmem:[%s2236_s7 + $0x30] sm:$0xff] %v1097_v23  ;;  %v605_v24 = vmul.f32 %v1521_v15, %v2053_v51  ;;  %v314_v43 = vadd.f32 %v1974_v16, %v296_v9  ;;  %v382_v45 = vmul.f32 %v1988_v22, %v2448_v33  ;;  %v468_v10 = vmul.f32 %v2012_v32, %v2448_v33 }
  0xb5   : > { %v1525_v49 = vpop.eup %1524  ;;  %v1050_v47 = vadd.f32 %v1034_v0, %v964_v63  ;;  %v449_v20 = vadd.f32 %v433_v17, %v363_v27  ;;  %v691_v58 = vmul.f32 %v1523_v41, %v2079_v7  ;;  %v554_v35 = vmul.f32 %v2038_v44, %v2448_v33  ;;  %v2496_v17 = vld [vmem:[%s1933_s28 + $0x50] sm:$0xff] }
  0xb6   : > { %v1527_v54 = vpop.eup %1526  ;;  %v777_v37 = vmul.f32 %v1525_v49, %v2101_v26  ;;  %1534 = vtanh.f32 %v314_v43  ;;  %v400_v39 = vadd.f32 %v1995_v25, %v382_v45  ;;  %v486_v61 = vadd.f32 %v2019_v36, %v468_v10 }
  0xb7   : > { %v1529_v1 = vpop.eup %1528  ;;  %1536 = vtanh.f32 %v1050_v47  ;;  %v535_v50 = vadd.f32 %v519_v30, %v449_v20  ;;  %v863_v0 = vmul.f32 %v1527_v54, %v2118_v46  ;;  %v572_v2 = vadd.f32 %v2047_v48, %v554_v35 }
  0xb8   : > { %v1531_v42 = vpop.eup %1530  ;;  %v949_v53 = vmul.f32 %v1529_v1, %v2136_v5  ;;  %1538 = vtanh.f32 %v400_v39  ;;  %v640_v62 = vmul.f32 %v2063_v57, %v2448_v33  ;;  %v726_v3 = vmul.f32 %v2088_v12, %v2448_v33 }
  0xb9   : > { %v1533_v8 = vpop.eup %1532  ;;  %v621_v55 = vadd.f32 %v605_v24, %v535_v50  ;;  %v1035_v59 = vmul.f32 %v1531_v42, %v2148_v31  ;;  %1540 = vtanh.f32 %v486_v61  ;;  %v812_v23 = vmul.f32 %v2109_v34, %v2448_v33 }
  0xba   : > { %v260_v9 = vmul.f32 %v1533_v8, %v1968_v13  ;;  %1542 = vtanh.f32 %v572_v2  ;;  %v658_v15 = vadd.f32 %v2072_v60, %v640_v62  ;;  %v744_v63 = vadd.f32 %v2095_v19, %v726_v3 }
  0xbb   : > { %v707_v27 = vadd.f32 %v691_v58, %v621_v55  ;;  %v830_v30 = vadd.f32 %v2114_v38, %v812_v23  ;;  %v898_v41 = vmul.f32 %v2125_v52, %v2448_v33  ;;  %v984_v24 = vmul.f32 %v2141_v11, %v2448_v33 }
  0xbc   : > { %v1535_v43 = vpop.eup %1534  ;;  %v278_v45 = vadd.f32 %v1978_v18, %v260_v9  ;;  %1544 = vtanh.f32 %v658_v15  ;;  %v209_v10 = vmul.f32 %v1951_v4, %v2496_v17  ;;  %v297_v49 = vmul.f32 %v1970_v14, %v2496_v17 }
  0xbd   : > { %v1537_v47 = vpop.eup %1536  ;;  %v793_v20 = vadd.f32 %v777_v37, %v707_v27  ;;  %v348_v58 = vmul.f32 %v1535_v43, %v2003_v28  ;;  %1546 = vtanh.f32 %v744_v63  ;;  %v916_v35 = vadd.f32 %v2130_v56, %v898_v41 }
  0xbe   : > { %v1539_v54 = vpop.eup %1538  ;;  %v1082_v39 = vmul.f32 0.5, %v1537_v47  ;;  %1548 = vtanh.f32 %v830_v30  ;;  %v1002_v33 = vadd.f32 %v2145_v21, %v984_v24  ;;  %v227_v61 = vadd.f32 %v1957_v6, %v209_v10 }
  0xbf   : > { %v1541_v1 = vpop.eup %1540  ;;  %v879_v50 = vadd.f32 %v863_v0, %v793_v20  ;;  %v364_v2 = vadd.f32 %v348_v58, %v278_v45  ;;  %v434_v42 = vmul.f32 %v1539_v54, %v2005_v29  ;;  %1550 = vtanh.f32 %v916_v35 }
  0xc0   : > { %v1543_v37 = vpop.eup %1542  ;;  %v1098_v62 = vadd.f32 0.5, %v1082_v39  ;;  %v520_v3 = vmul.f32 %v1541_v1, %v2027_v40  ;;  %1552 = vtanh.f32 %v1002_v33  ;;  %v315_v8 = vadd.f32 %v1974_v16, %v297_v49 }
  0xc1   : > { %v965_v55 = vadd.f32 %v949_v53, %v879_v50  ;;  %v450_v23 = vadd.f32 %v434_v42, %v364_v2  ;;  %v606_v9 = vmul.f32 %v1543_v37, %v2053_v51  ;;  %1554 = vtanh.f32 %v227_v61 }
  0xc2   : > { %v1545_v15 = vpop.eup %1544  ;;  %1114 = vst [vmem:[%s2236_s7 + $0x38] sm:$0xff] %v1098_v62  ;;  %1556 = vtanh.f32 %v315_v8  ;;  %v383_v0 = vmul.f32 %v1988_v22, %v2496_v17  ;;  %v469_v63 = vmul.f32 %v2012_v32, %v2496_v17  ;;  %v555_v27 = vmul.f32 %v2038_v44, %v2496_v17  ;;  %v2544_v62 = vld [vmem:[%s1933_s28 + $0x58] sm:$0xff] }
  0xc3   : > { %v1547_v30 = vpop.eup %1546  ;;  %v1051_v41 = vadd.f32 %v1035_v59, %v965_v55  ;;  %v536_v24 = vadd.f32 %v520_v3, %v450_v23  ;;  %v692_v53 = vmul.f32 %v1545_v15, %v2079_v7  ;;  %v641_v43 = vmul.f32 %v2063_v57, %v2496_v17 }
  0xc4   : > { %v1549_v45 = vpop.eup %1548  ;;  %v778_v10 = vmul.f32 %v1547_v30, %v2101_v26  ;;  %v401_v49 = vadd.f32 %v1995_v25, %v383_v0  ;;  %v487_v47 = vadd.f32 %v2019_v36, %v469_v63  ;;  %v573_v20 = vadd.f32 %v2047_v48, %v555_v27 }
  0xc5   : > { %v1551_v58 = vpop.eup %1550  ;;  %1558 = vtanh.f32 %v1051_v41  ;;  %v622_v35 = vadd.f32 %v606_v9, %v536_v24  ;;  %v864_v59 = vmul.f32 %v1549_v45, %v2118_v46  ;;  %v659_v54 = vadd.f32 %v2072_v60, %v641_v43 }
  0xc6   : > { %v1553_v39 = vpop.eup %1552  ;;  %v950_v33 = vmul.f32 %v1551_v58, %v2136_v5  ;;  %1560 = vtanh.f32 %v401_v49  ;;  %v727_v61 = vmul.f32 %v2088_v12, %v2496_v17  ;;  %v813_v1 = vmul.f32 %v2109_v34, %v2496_v17 }
  0xc7   : > { %v1555_v50 = vpop.eup %1554  ;;  %v708_v2 = vadd.f32 %v692_v53, %v622_v35  ;;  %v1036_v42 = vmul.f32 %v1553_v39, %v2148_v31  ;;  %1562 = vtanh.f32 %v487_v47  ;;  %v899_v37 = vmul.f32 %v2125_v52, %v2496_v17 }
  0xc8   : > { %v1557_v3 = vpop.eup %1556  ;;  %v261_v8 = vmul.f32 %v1555_v50, %v1968_v13  ;;  %1564 = vtanh.f32 %v573_v20  ;;  %v745_v55 = vadd.f32 %v2095_v19, %v727_v61  ;;  %v831_v23 = vadd.f32 %v2114_v38, %v813_v1 }
  0xc9   : > { %v794_v9 = vadd.f32 %v778_v10, %v708_v2  ;;  %v349_v15 = vmul.f32 %v1557_v3, %v2003_v28  ;;  %1566 = vtanh.f32 %v659_v54  ;;  %v917_v0 = vadd.f32 %v2130_v56, %v899_v37 }
  0xca   : > { %v279_v63 = vadd.f32 %v1978_v18, %v261_v8  ;;  %1568 = vtanh.f32 %v745_v55  ;;  %v985_v27 = vmul.f32 %v2141_v11, %v2496_v17  ;;  %v210_v30 = vmul.f32 %v1951_v4, %v2544_v62 }
  0xcb   : > { %v1559_v41 = vpop.eup %1558  ;;  %v880_v24 = vadd.f32 %v864_v59, %v794_v9  ;;  %1570 = vtanh.f32 %v831_v23  ;;  %v298_v53 = vmul.f32 %v1970_v14, %v2544_v62  ;;  %v384_v43 = vmul.f32 %v1988_v22, %v2544_v62 }
  0xcc   : > { %v1561_v45 = vpop.eup %1560  ;;  %v1083_v10 = vmul.f32 0.5, %v1559_v41  ;;  %v365_v49 = vadd.f32 %v349_v15, %v279_v63  ;;  %1572 = vtanh.f32 %v917_v0  ;;  %v1003_v47 = vadd.f32 %v2145_v21, %v985_v27 }
  0xcd   : > { %v1563_v20 = vpop.eup %1562  ;;  %v966_v17 = vadd.f32 %v950_v33, %v880_v24  ;;  %v435_v58 = vmul.f32 %v1561_v45, %v2005_v29  ;;  %v228_v35 = vadd.f32 %v1957_v6, %v210_v30  ;;  %v316_v59 = vadd.f32 %v1974_v16, %v298_v53 }
  0xce   : > { %v1565_v54 = vpop.eup %1564  ;;  %v1099_v39 = vadd.f32 0.5, %v1083_v10  ;;  %v521_v61 = vmul.f32 %v1563_v20, %v2027_v40  ;;  %1574 = vtanh.f32 %v1003_v47  ;;  %v402_v1 = vadd.f32 %v1995_v25, %v384_v43 }
  0xcf   : > { %v1567_v50 = vpop.eup %1566  ;;  %v1052_v2 = vadd.f32 %v1036_v42, %v966_v17  ;;  %v451_v37 = vadd.f32 %v435_v58, %v365_v49  ;;  %v607_v3 = vmul.f32 %v1565_v54, %v2053_v51  ;;  %1576 = vtanh.f32 %v228_v35  ;;  %v2592_v54 = vld [vmem:[%s1933_s28 + $0x60] sm:$0xff] }
  0xd0   : > { %v1569_v33 = vpop.eup %1568  ;;  %1115 = vst [vmem:[%s2236_s7 + $0x40] sm:$0xff] %v1099_v39  ;;  %v693_v8 = vmul.f32 %v1567_v50, %v2079_v7  ;;  %1578 = vtanh.f32 %v316_v59  ;;  %v470_v55 = vmul.f32 %v2012_v32, %v2544_v62  ;;  %v556_v23 = vmul.f32 %v2038_v44, %v2544_v62 }
  0xd1   : > { %v1571_v9 = vpop.eup %1570  ;;  %1580 = vtanh.f32 %v1052_v2  ;;  %v537_v15 = vadd.f32 %v521_v61, %v451_v37  ;;  %v779_v42 = vmul.f32 %v1569_v33, %v2101_v26  ;;  %v642_v0 = vmul.f32 %v2063_v57, %v2544_v62 }
  0xd2   : > { %v1573_v63 = vpop.eup %1572  ;;  %v865_v27 = vmul.f32 %v1571_v9, %v2118_v46  ;;  %1582 = vtanh.f32 %v402_v1  ;;  %v488_v30 = vadd.f32 %v2019_v36, %v470_v55  ;;  %v574_v41 = vadd.f32 %v2047_v48, %v556_v23 }
  0xd3   : > { %v623_v24 = vadd.f32 %v607_v3, %v537_v15  ;;  %v951_v53 = vmul.f32 %v1573_v63, %v2136_v5  ;;  %v660_v43 = vadd.f32 %v2072_v60, %v642_v0  ;;  %v728_v45 = vmul.f32 %v2088_v12, %v2544_v62 }
  0xd4   : > { %v1575_v10 = vpop.eup %1574  ;;  %1584 = vtanh.f32 %v488_v30  ;;  %v814_v49 = vmul.f32 %v2109_v34, %v2544_v62  ;;  %v900_v47 = vmul.f32 %v2125_v52, %v2544_v62  ;;  %v986_v20 = vmul.f32 %v2141_v11, %v2544_v62 }
  0xd5   : > { %v1577_v17 = vpop.eup %1576  ;;  %v709_v58 = vadd.f32 %v693_v8, %v623_v24  ;;  %v1037_v35 = vmul.f32 %v1575_v10, %v2148_v31  ;;  %1586 = vtanh.f32 %v574_v41  ;;  %v746_v59 = vadd.f32 %v2095_v19, %v728_v45 }
  0xd6   : > { %v1579_v39 = vpop.eup %1578  ;;  %v262_v61 = vmul.f32 %v1577_v17, %v1968_v13  ;;  %1588 = vtanh.f32 %v660_v43  ;;  %v832_v1 = vadd.f32 %v2114_v38, %v814_v49  ;;  %v918_v50 = vadd.f32 %v2130_v56, %v900_v47 }
  0xd7   : > { %v1581_v2 = vpop.eup %1580  ;;  %v795_v37 = vadd.f32 %v779_v42, %v709_v58  ;;  %v350_v62 = vmul.f32 %v1579_v39, %v2003_v28  ;;  %1590 = vtanh.f32 %v746_v59  ;;  %v1004_v3 = vadd.f32 %v2145_v21, %v986_v20 }
  0xd8   : > { %v1583_v33 = vpop.eup %1582  ;;  %v1084_v8 = vmul.f32 0.5, %v1581_v2  ;;  %v280_v55 = vadd.f32 %v1978_v18, %v262_v61  ;;  %1592 = vtanh.f32 %v832_v1  ;;  %v211_v23 = vmul.f32 %v1951_v4, %v2592_v54 }
  0xd9   : > { %v881_v9 = vadd.f32 %v865_v27, %v795_v37  ;;  %v436_v15 = vmul.f32 %v1583_v33, %v2005_v29  ;;  %1594 = vtanh.f32 %v918_v50  ;;  %v299_v42 = vmul.f32 %v1970_v14, %v2592_v54 }
  0xda   : > { %v1585_v0 = vpop.eup %1584  ;;  %v1100_v63 = vadd.f32 0.5, %v1084_v8  ;;  %v366_v30 = vadd.f32 %v350_v62, %v280_v55  ;;  %1596 = vtanh.f32 %v1004_v3  ;;  %v229_v41 = vadd.f32 %v1957_v6, %v211_v23 }
  0xdb   : > { %v1587_v24 = vpop.eup %1586  ;;  %v967_v43 = vadd.f32 %v951_v53, %v881_v9  ;;  %v522_v45 = vmul.f32 %v1585_v0, %v2027_v40  ;;  %v317_v10 = vadd.f32 %v1974_v16, %v299_v42  ;;  %v385_v27 = vmul.f32 %v1988_v22, %v2592_v54 }
  0xdc   : > { %v1589_v49 = vpop.eup %1588  ;;  %1116 = vst [vmem:[%s2236_s7 + $0x48] sm:$0xff] %v1100_v63  ;;  %v452_v47 = vadd.f32 %v436_v15, %v366_v30  ;;  %v608_v20 = vmul.f32 %v1587_v24, %v2053_v51  ;;  %1598 = vtanh.f32 %v229_v41  ;;  %v471_v17 = vmul.f32 %v2012_v32, %v2592_v54  ;;  %v2628_v15 = vld [vmem:[%s1933_s28 + $0x68] sm:$0xff] }
  0xdd   : > { %v1591_v58 = vpop.eup %1590  ;;  %v1053_v59 = vadd.f32 %v1037_v35, %v967_v43  ;;  %v694_v53 = vmul.f32 %v1589_v49, %v2079_v7  ;;  %1600 = vtanh.f32 %v317_v10  ;;  %v403_v39 = vadd.f32 %v1995_v25, %v385_v27 }
  0xde   : > { %v1593_v61 = vpop.eup %1592  ;;  %v538_v1 = vadd.f32 %v522_v45, %v452_v47  ;;  %v780_v50 = vmul.f32 %v1591_v58, %v2101_v26  ;;  %v489_v2 = vadd.f32 %v2019_v36, %v471_v17  ;;  %v557_v37 = vmul.f32 %v2038_v44, %v2592_v54 }
  0xdf   : > { %v1595_v62 = vpop.eup %1594  ;;  %1602 = vtanh.f32 %v1053_v59  ;;  %v866_v3 = vmul.f32 %v1593_v61, %v2118_v46  ;;  %v643_v35 = vmul.f32 %v2063_v57, %v2592_v54  ;;  %v729_v33 = vmul.f32 %v2088_v12, %v2592_v54 }
  0xe0   : > { %v1597_v8 = vpop.eup %1596  ;;  %v624_v55 = vadd.f32 %v608_v20, %v538_v1  ;;  %v952_v23 = vmul.f32 %v1595_v62, %v2136_v5  ;;  %1604 = vtanh.f32 %v403_v39  ;;  %v575_v9 = vadd.f32 %v2047_v48, %v557_v37 }
  0xe1   : > { %v1038_v42 = vmul.f32 %v1597_v8, %v2148_v31  ;;  %1606 = vtanh.f32 %v489_v2  ;;  %v661_v0 = vadd.f32 %v2072_v60, %v643_v35  ;;  %v747_v63 = vadd.f32 %v2095_v19, %v729_v33 }
  0xe2   : > { %v1599_v30 = vpop.eup %1598  ;;  %v710_v41 = vadd.f32 %v694_v53, %v624_v55  ;;  %1608 = vtanh.f32 %v575_v9  ;;  %v815_v24 = vmul.f32 %v2109_v34, %v2592_v54  ;;  %v901_v43 = vmul.f32 %v2125_v52, %v2592_v54 }
  0xe3   : > { %v1601_v45 = vpop.eup %1600  ;;  %v263_v10 = vmul.f32 %v1599_v30, %v1968_v13  ;;  %1610 = vtanh.f32 %v661_v0  ;;  %v987_v27 = vmul.f32 %v2141_v11, %v2592_v54  ;;  %v212_v49 = vmul.f32 %v1951_v4, %v2628_v15 }
  0xe4   : > { %v796_v47 = vadd.f32 %v780_v50, %v710_v41  ;;  %v351_v20 = vmul.f32 %v1601_v45, %v2003_v28  ;;  %1612 = vtanh.f32 %v747_v63  ;;  %v833_v17 = vadd.f32 %v2114_v38, %v815_v24 }
  0xe5   : > { %v1603_v58 = vpop.eup %1602  ;;  %v281_v59 = vadd.f32 %v1978_v18, %v263_v10  ;;  %v919_v53 = vadd.f32 %v2130_v56, %v901_v43  ;;  %v1005_v39 = vadd.f32 %v2145_v21, %v987_v27  ;;  %v230_v61 = vadd.f32 %v1957_v6, %v212_v49 }
  0xe6   : > { %v1605_v1 = vpop.eup %1604  ;;  %v1085_v54 = vmul.f32 0.5, %v1603_v58  ;;  %v882_v2 = vadd.f32 %v866_v3, %v796_v47  ;;  %1614 = vtanh.f32 %v833_v17  ;;  %v300_v50 = vmul.f32 %v1970_v14, %v2628_v15 }
  0xe7   : > { %v1607_v37 = vpop.eup %1606  ;;  %v367_v62 = vadd.f32 %v351_v20, %v281_v59  ;;  %v437_v35 = vmul.f32 %v1605_v1, %v2005_v29  ;;  %1616 = vtanh.f32 %v919_v53  ;;  %v386_v33 = vmul.f32 %v1988_v22, %v2628_v15 }
  0xe8   : > { %v1609_v8 = vpop.eup %1608  ;;  %v1101_v55 = vadd.f32 0.5, %v1085_v54  ;;  %v968_v9 = vadd.f32 %v952_v23, %v882_v2  ;;  %v523_v0 = vmul.f32 %v1607_v37, %v2027_v40  ;;  %1618 = vtanh.f32 %v1005_v39  ;;  %v2675_v37 = vld [vmem:[%s1933_s28 + $0x70] sm:$0xff] }
  0xe9   : > { %v1611_v3 = vpop.eup %1610  ;;  %v453_v63 = vadd.f32 %v437_v35, %v367_v62  ;;  %v609_v30 = vmul.f32 %v1609_v8, %v2053_v51  ;;  %1620 = vtanh.f32 %v230_v61  ;;  %v318_v41 = vadd.f32 %v1974_v16, %v300_v50 }
  0xea   : > { %v1613_v24 = vpop.eup %1612  ;;  %1117 = vst [vmem:[%s2236_s7 + $0x50] sm:$0xff] %v1101_v55  ;;  %v1054_v43 = vadd.f32 %v1038_v42, %v968_v9  ;;  %v695_v45 = vmul.f32 %v1611_v3, %v2079_v7  ;;  %v404_v10 = vadd.f32 %v1995_v25, %v386_v33  ;;  %v472_v23 = vmul.f32 %v2012_v32, %v2628_v15 }
  0xeb   : > { %v539_v27 = vadd.f32 %v523_v0, %v453_v63  ;;  %v781_v49 = vmul.f32 %v1613_v24, %v2101_v26  ;;  %1622 = vtanh.f32 %v318_v41  ;;  %v558_v47 = vmul.f32 %v2038_v44, %v2628_v15 }
  0xec   : > { %v1615_v20 = vpop.eup %1614  ;;  %1624 = vtanh.f32 %v1054_v43  ;;  %v490_v17 = vadd.f32 %v2019_v36, %v472_v23  ;;  %v644_v42 = vmul.f32 %v2063_v57, %v2628_v15  ;;  %v730_v58 = vmul.f32 %v2088_v12, %v2628_v15 }
  0xed   : > { %v1617_v59 = vpop.eup %1616  ;;  %v625_v53 = vadd.f32 %v609_v30, %v539_v27  ;;  %v867_v39 = vmul.f32 %v1615_v20, %v2118_v46  ;;  %1626 = vtanh.f32 %v404_v10  ;;  %v576_v61 = vadd.f32 %v2047_v48, %v558_v47 }
  0xee   : > { %v1619_v1 = vpop.eup %1618  ;;  %v953_v54 = vmul.f32 %v1617_v59, %v2136_v5  ;;  %1628 = vtanh.f32 %v490_v17  ;;  %v662_v2 = vadd.f32 %v2072_v60, %v644_v42  ;;  %v748_v50 = vadd.f32 %v2095_v19, %v730_v58 }
  0xef   : > { %v1621_v62 = vpop.eup %1620  ;;  %v711_v35 = vadd.f32 %v695_v45, %v625_v53  ;;  %v1039_v33 = vmul.f32 %v1619_v1, %v2148_v31  ;;  %1630 = vtanh.f32 %v576_v61  ;;  %v816_v8 = vmul.f32 %v2109_v34, %v2628_v15 }
  0xf0   : > { %v264_v55 = vmul.f32 %v1621_v62, %v1968_v13  ;;  %1632 = vtanh.f32 %v662_v2  ;;  %v902_v9 = vmul.f32 %v2125_v52, %v2628_v15  ;;  %v988_v0 = vmul.f32 %v2141_v11, %v2628_v15 }
  0xf1   : > { %v1623_v3 = vpop.eup %1622  ;;  %v797_v63 = vadd.f32 %v781_v49, %v711_v35  ;;  %1634 = vtanh.f32 %v748_v50  ;;  %v834_v30 = vadd.f32 %v2114_v38, %v816_v8  ;;  %v213_v41 = vmul.f32 %v1951_v4, %v2675_v37 }
  0xf2   : > { %v1625_v24 = vpop.eup %1624  ;;  %v282_v43 = vadd.f32 %v1978_v18, %v264_v55  ;;  %v352_v45 = vmul.f32 %v1623_v3, %v2003_v28  ;;  %v920_v10 = vadd.f32 %v2130_v56, %v902_v9  ;;  %v1006_v23 = vadd.f32 %v2145_v21, %v988_v0 }
  0xf3   : > { %v1627_v27 = vpop.eup %1626  ;;  %v1086_v47 = vmul.f32 0.5, %v1625_v24  ;;  %v883_v15 = vadd.f32 %v867_v39, %v797_v63  ;;  %1636 = vtanh.f32 %v834_v30  ;;  %v231_v49 = vadd.f32 %v1957_v6, %v213_v41 }
  0xf4   : > { %v1629_v20 = vpop.eup %1628  ;;  %v368_v17 = vadd.f32 %v352_v45, %v282_v43  ;;  %v438_v42 = vmul.f32 %v1627_v27, %v2005_v29  ;;  %1638 = vtanh.f32 %v920_v10  ;;  %v301_v58 = vmul.f32 %v1970_v14, %v2675_v37 }
  0xf5   : > { %v1631_v59 = vpop.eup %1630  ;;  %v1102_v53 = vadd.f32 0.5, %v1086_v47  ;;  %v969_v61 = vadd.f32 %v953_v54, %v883_v15  ;;  %v524_v1 = vmul.f32 %v1629_v20, %v2027_v40  ;;  %1640 = vtanh.f32 %v1006_v23 }
  0xf6   : > { %v1633_v2 = vpop.eup %1632  ;;  %v454_v39 = vadd.f32 %v438_v42, %v368_v17  ;;  %v610_v50 = vmul.f32 %v1631_v59, %v2053_v51  ;;  %1642 = vtanh.f32 %v231_v49  ;;  %v319_v62 = vadd.f32 %v1974_v16, %v301_v58  ;;  %v2721_v17 = vld [vmem:[%s1933_s28 + $0x78] sm:$0xff] }
  0xf7   : > { %v1635_v35 = vpop.eup %1634  ;;  %1118 = vst [vmem:[%s2236_s7 + $0x58] sm:$0xff] %v1102_v53  ;;  %v1055_v8 = vadd.f32 %v1039_v33, %v969_v61  ;;  %v696_v55 = vmul.f32 %v1633_v2, %v2079_v7  ;;  %v387_v9 = vmul.f32 %v1988_v22, %v2675_v37  ;;  %v473_v54 = vmul.f32 %v2012_v32, %v2675_v37 }
  0xf8   : > { %v540_v0 = vadd.f32 %v524_v1, %v454_v39  ;;  %v782_v3 = vmul.f32 %v1635_v35, %v2101_v26  ;;  %1644 = vtanh.f32 %v319_v62  ;;  %v559_v63 = vmul.f32 %v2038_v44, %v2675_v37 }
  0xf9   : > { %v1637_v30 = vpop.eup %1636  ;;  %1646 = vtanh.f32 %v1055_v8  ;;  %v405_v33 = vadd.f32 %v1995_v25, %v387_v9  ;;  %v491_v41 = vadd.f32 %v2019_v36, %v473_v54  ;;  %v645_v24 = vmul.f32 %v2063_v57, %v2675_v37 }
  0xfa   : > { %v1639_v43 = vpop.eup %1638  ;;  %v626_v45 = vadd.f32 %v610_v50, %v540_v0  ;;  %v868_v10 = vmul.f32 %v1637_v30, %v2118_v46  ;;  %v577_v23 = vadd.f32 %v2047_v48, %v559_v63  ;;  %v731_v27 = vmul.f32 %v2088_v12, %v2675_v37 }
  0xfb   : > { %v1641_v47 = vpop.eup %1640  ;;  %v954_v15 = vmul.f32 %v1639_v43, %v2136_v5  ;;  %1648 = vtanh.f32 %v405_v33  ;;  %v663_v49 = vadd.f32 %v2072_v60, %v645_v24  ;;  %v817_v20 = vmul.f32 %v2109_v34, %v2675_v37 }
  0xfc   : > { %v1643_v42 = vpop.eup %1642  ;;  %v712_v58 = vadd.f32 %v696_v55, %v626_v45  ;;  %v1040_v59 = vmul.f32 %v1641_v47, %v2148_v31  ;;  %1650 = vtanh.f32 %v491_v41  ;;  %v749_v53 = vadd.f32 %v2095_v19, %v731_v27 }
  0xfd   : > { %v265_v61 = vmul.f32 %v1643_v42, %v1968_v13  ;;  %1652 = vtanh.f32 %v577_v23  ;;  %v835_v1 = vadd.f32 %v2114_v38, %v817_v20  ;;  %v903_v2 = vmul.f32 %v2125_v52, %v2675_v37 }
  0xfe   : > { %v1645_v39 = vpop.eup %1644  ;;  %v798_v50 = vadd.f32 %v782_v3, %v712_v58  ;;  %1654 = vtanh.f32 %v663_v49  ;;  %v989_v62 = vmul.f32 %v2141_v11, %v2675_v37  ;;  %v214_v35 = vmul.f32 %v1951_v4, %v2721_v17 }
  0xff   : > { %v1647_v8 = vpop.eup %1646  ;;  %v283_v55 = vadd.f32 %v1978_v18, %v265_v61  ;;  %v353_v9 = vmul.f32 %v1645_v39, %v2003_v28  ;;  %1656 = vtanh.f32 %v749_v53  ;;  %v921_v54 = vadd.f32 %v2130_v56, %v903_v2 }
 0x100   : > { %v1087_v0 = vmul.f32 0.5, %v1647_v8  ;;  %v884_v63 = vadd.f32 %v868_v10, %v798_v50  ;;  %1658 = vtanh.f32 %v835_v1  ;;  %v1007_v3 = vadd.f32 %v2145_v21, %v989_v62 }
 0x101   : > { %v1649_v30 = vpop.eup %1648  ;;  %v369_v33 = vadd.f32 %v353_v9, %v283_v55  ;;  %1660 = vtanh.f32 %v921_v54  ;;  %v232_v37 = vadd.f32 %v1957_v6, %v214_v35  ;;  %v302_v4 = vmul.f32 %v1970_v14, %v2721_v17 }
 0x102   : > { %v1651_v41 = vpop.eup %1650  ;;  %v1103_v24 = vadd.f32 0.5, %v1087_v0  ;;  %v970_v43 = vadd.f32 %v954_v15, %v884_v63  ;;  %v439_v45 = vmul.f32 %v1649_v30, %v2005_v29  ;;  %1662 = vtanh.f32 %v1007_v3 }
 0x103   : > { %v1653_v23 = vpop.eup %1652  ;;  %v525_v10 = vmul.f32 %v1651_v41, %v2027_v40  ;;  %1664 = vtanh.f32 %v232_v37  ;;  %v320_v27 = vadd.f32 %v1974_v16, %v302_v4  ;;  %v388_v47 = vmul.f32 %v1988_v22, %v2721_v17 }
 0x104   : > { %v1655_v49 = vpop.eup %1654  ;;  %1119 = vst [vmem:[%s2236_s7 + $0x60] sm:$0xff] %v1103_v24  ;;  %v1056_v6 = vadd.f32 %v1040_v59, %v970_v43  ;;  %v455_v20 = vadd.f32 %v439_v45, %v369_v33  ;;  %v611_v14 = vmul.f32 %v1653_v23, %v2053_v51  ;;  %v474_v15 = vmul.f32 %v2012_v32, %v2721_v17 }
 0x105   : > { %v1657_v42 = vpop.eup %1656  ;;  %1666 = vtanh.f32 %v320_v27  ;;  %v406_v58 = vadd.f32 %v1995_v25, %v388_v47  ;;  %v560_v53 = vmul.f32 %v2038_v44, %v2721_v17  ;;  %v697_v22 = vmul.f32 %v1655_v49, %v2079_v7 }
 0x106   : > { %v1659_v16 = vpop.eup %1658  ;;  %1668 = vtanh.f32 %v1056_v6  ;;  %v541_v61 = vadd.f32 %v525_v10, %v455_v20  ;;  %v492_v59 = vadd.f32 %v2019_v36, %v474_v15  ;;  %v646_v32 = vmul.f32 %v2063_v57, %v2721_v17 }
 0x107   : > { %v1661_v1 = vpop.eup %1660  ;;  %1670 = vtanh.f32 %v406_v58  ;;  %v578_v2 = vadd.f32 %v2047_v48, %v560_v53  ;;  %v783_v25 = vmul.f32 %v1657_v42, %v2101_v26  ;;  %v732_v44 = vmul.f32 %v2088_v12, %v2721_v17 }
 0x108   : > { %v1663_v39 = vpop.eup %1662  ;;  %v627_v50 = vadd.f32 %v611_v14, %v541_v61  ;;  %1672 = vtanh.f32 %v492_v59  ;;  %v869_v35 = vmul.f32 %v1659_v16, %v2118_v46  ;;  %v664_v36 = vadd.f32 %v2072_v60, %v646_v32 }
 0x109   : > { %v1665_v62 = vpop.eup %1664  ;;  %1674 = vtanh.f32 %v578_v2  ;;  %v818_v48 = vmul.f32 %v2109_v34, %v2721_v17  ;;  %v750_v55 = vadd.f32 %v2095_v19, %v732_v44  ;;  %v904_v9 = vmul.f32 %v2125_v52, %v2721_v17 }
 0x10a   : > { %v713_v8 = vadd.f32 %v697_v22, %v627_v50  ;;  %v266_v57 = vmul.f32 %v1665_v62, %v1968_v13  ;;  %v955_v12 = vmul.f32 %v1661_v1, %v2136_v5  ;;  %1676 = vtanh.f32 %v664_v36 }
 0x10b   : > { %v1667_v54 = vpop.eup %1666  ;;  %v836_v0 = vadd.f32 %v2114_v38, %v818_v48  ;;  %v990_v60 = vmul.f32 %v2141_v11, %v2721_v17  ;;  %1678 = vtanh.f32 %v750_v55  ;;  %v922_v52 = vadd.f32 %v2130_v56, %v904_v9 }
 0x10c   : > { %v1669_v63 = vpop.eup %1668  ;;  %v799_v3 = vadd.f32 %v783_v25, %v713_v8  ;;  %v284_v34 = vadd.f32 %v1978_v18, %v266_v57  ;;  %v354_v13 = vmul.f32 %v1667_v54, %v2003_v28  ;;  %v1041_v4 = vmul.f32 %v1663_v39, %v2148_v31 }
 0x10d   : > { %v1671_v19 = vpop.eup %1670  ;;  %v1088_v30 = vmul.f32 0.5, %v1669_v63  ;;  %1680 = vtanh.f32 %v836_v0  ;;  %v1008_v33 = vadd.f32 %v2145_v21, %v990_v60 }
 0x10e   : > { %v1673_v37 = vpop.eup %1672  ;;  %v885_v38 = vadd.f32 %v869_v35, %v799_v3  ;;  %v370_v11 = vadd.f32 %v354_v13, %v284_v34  ;;  %v440_v17 = vmul.f32 %v1671_v19, %v2005_v29  ;;  %1682 = vtanh.f32 %v922_v52 }
 0x10f   : > { %v1675_v41 = vpop.eup %1674  ;;  %v1104_v18 = vadd.f32 0.5, %v1088_v30  ;;  %v526_v28 = vmul.f32 %v1673_v37, %v2027_v40  ;;  %1684 = vtanh.f32 %v1008_v33 }
 0x110   : > { %v971_v24 = vadd.f32 %v955_v12, %v885_v38  ;;  %v456_v43 = vadd.f32 %v440_v17, %v370_v11  ;;  %v612_v45 = vmul.f32 %v1675_v41, %v2053_v51  ;;  %v1677_v23 = vpop.eup %1676 }
 0x111   : > { %1120 = vst [vmem:[%s2236_s7 + $0x68] sm:$0xff] %v1104_v18  ;;  %v1679_v56 = vpop.eup %1678  ;;  %v698_v27 = vmul.f32 %v1677_v23, %v2079_v7 }
 0x112   : > { %v1057_v21 = vadd.f32 %v1041_v4, %v971_v24  ;;  %v542_v10 = vadd.f32 %v526_v28, %v456_v43  ;;  %v784_v40 = vmul.f32 %v1679_v56, %v2101_v26 }
 0x113   : > { %v1681_v47 = vpop.eup %1680 }
 0x114   : > { %1686 = vtanh.f32 %v1057_v21  ;;  %v628_v29 = vadd.f32 %v612_v45, %v542_v10  ;;  %v1683_v49 = vpop.eup %1682  ;;  %v870_v51 = vmul.f32 %v1681_v47, %v2118_v46 }
 0x115   : > { %v1685_v20 = vpop.eup %1684  ;;  %v956_v15 = vmul.f32 %v1683_v49, %v2136_v5 }
 0x116   : > { %v714_v6 = vadd.f32 %v698_v27, %v628_v29  ;;  %v1042_v7 = vmul.f32 %v1685_v20, %v2148_v31 }
 0x118   : > { %v800_v14 = vadd.f32 %v784_v40, %v714_v6 }
 0x11a   : > { %v1687_v42 = vpop.eup %1686  ;;  %v886_v58 = vadd.f32 %v870_v51, %v800_v14 }
 0x11b   : > { %v1089_v53 = vmul.f32 0.5, %v1687_v42 }
 0x11c   : > { %v972_v16 = vadd.f32 %v956_v15, %v886_v58 }
 0x11d   : > { %v1105_v61 = vadd.f32 0.5, %v1089_v53 }
 0x11e   : > { %v1058_v22 = vadd.f32 %v1042_v7, %v972_v16 }
 0x11f   : > { %1121 = vst [vmem:[%s2236_s7 + $0x70] sm:$0xff] %v1105_v61 }
 0x120   : > { %1688 = vtanh.f32 %v1058_v22 }
 0x126   : > { %v1689_v26 = vpop.eup %1688 }
 0x127   : > { %v1090_v46 = vmul.f32 0.5, %v1689_v26 }
 0x129   : > { %v1106_v5 = vadd.f32 0.5, %v1090_v46 }
 0x12b   : > { %1122 = vst [vmem:[%s2236_s7 + $0x78] sm:$0xff] %v1106_v5 }
 0x12c   : > { %1762 = shalt.err (!%p1759_p8)
}
 0x12d   : > { %s1810_s4 = smov 512   ;;  %s1811_s29 = smov 32  }
 0x12e   : > { %1283 = dma.vmem_to_hbm [thread:$0]  (%p1879_p11), %s1138_s8, 2048, %s1140_s14, %s1124_s16, %s1810_s4, %s1810_s4, %s1811_s29  }
 0x12f PF: > { %p1300_p9 = scmp.ge.s32.totalorder %s1805_s12, 2  ;;  %s1154_s30 = sand.u32 1, %s1793_s9  }
 0x130   : > { %s1155_s27 = scalar_lea.sflag [#allocation4], %s1154_s30 }
 0x131   : > { %p1294_p10 = pnand %p1300_p9, %p1883_p12 }
 0x133   : > { %p1295_p1 = pneg %p1294_p10 }
 0x135   : > { %1788 = dma.done.wait (%p1295_p1), %s1155_s27, 2048  }
 0x136   : > { %1790 = vsyncadd (%p1295_p1), %s1155_s27, 4294965248  ;;  %p16_p0 = scmp.ge.s32.totalorder %s1852_s15, 10   ;;  %s2830_s9 = smov %s1797_s10 }
 0x137   : > { %s2831_s10 = smov %s1801_s11  ;;  %s2832_s11 = smov %s1864_s18 }
 0x138   : > { %s2833_s12 = smov %s1852_s15  ;;  %18 = sbr.rel (!%p16_p0) target bundleno = 6 (0x6), region = 78 }
 0x13d   :  { %1161 = vsyncpa [#allocation3], 1 }
 0x13e   :  { %1163 = vsyncpa [#allocation3 + $0x1], 1 }
 0x13f   :  { %1164 = vsyncpa [#allocation4], 1 }
 0x140   :  { %1166 = vsyncpa [#allocation4 + $0x1], 1 }
 0x141   :  { %1167 = vsyncpa [#allocation5], 1 }
 0x142   :  { %1169 = vsyncpa [#allocation5 + $0x1], 1 }

</bundles_post_ra>
